<compile_context>
chip_gen: v6e
topology: v6e:2x2x1
jax: 0.10.0
libtpu: 0.0.40
codegen_flags: <defaults>
</compile_context>

<pallas_src>
import jax
import jax.numpy as jnp
from jax.experimental import pallas as pl
from jax.experimental.pallas import tpu as pltpu


# Conv output geometry for the 30x45 input required by x.view(-1, 192):
#   conv1 (k3,s2): 30x45 -> 14x22
#   conv2 (k3,s2): 14x22 -> 6x10
#   conv3 (k3,s1): 6x10  -> 4x8
#   conv4 (k3,s1): 4x8   -> 2x6, 16 channels -> 192 features per image
_H2, _W2 = 6, 10
_H3, _W3 = 4, 8
_H4, _W4 = 2, 6


# ----------------------------------------------------------------------------
# Fused kernel: conv1..conv4 + BN + ReLU + dueling head
# ----------------------------------------------------------------------------
def dqn_fused_kernel(p_ref,
                     w1b_ref, s1_ref, b1_ref,
                     w2s_ref, s2_ref, b2_ref,
                     w3p_ref, s3_ref, b3_ref,
                     w4p_ref, s4_ref, b4_ref,
                     wh1_ref, bh1_ref, wh2_ref, bh2_ref,
                     o_ref):
    f32 = jnp.float32
    bf16 = jnp.bfloat16
    B = o_ref.shape[0]

    def mxu(a, b):
        # bf16 MXU inputs, f32 accumulation (epilogues stay f32).
        return jnp.dot(a.astype(bf16), b.astype(bf16), preferred_element_type=f32)

    # ---- conv1 ∘ conv2 (both stride 2): two matmuls over the composed im2col ----
    # P[m, t*9+u]: conv1 tap u of the 3x3 input patch feeding conv2 tap t at
    # conv2-output row m = b*60 + ho2*10 + wo2.
    h1 = mxu(p_ref[...], w1b_ref[...])                        # [B*60, 72]
    h1 = jnp.maximum(h1 * s1_ref[...] + b1_ref[...], 0.0)     # BN1+ReLU (per tap, 72 lanes)
    z2 = mxu(h1, w2s_ref[...])                                # [B*60, 8]
    a2 = jnp.maximum(z2 * s2_ref[...] + b2_ref[...], 0.0)     # BN2+ReLU
    a2 = a2.reshape(B, _H2, _W2, 8)                           # lane dim unchanged

    # ---- conv3 (stride 1): im2col on lanes -> one K=72 matmul ----
    c3 = jnp.concatenate(
        [a2[:, kh:kh + _H3, kw:kw + _W3, :] for kh in range(3) for kw in range(3)],
        axis=-1).reshape(B * _H3 * _W3, 72)                   # [B*32, 72]
    z3 = mxu(c3, w3p_ref[...])
    a3 = jnp.maximum(z3 * s3_ref[...] + b3_ref[...], 0.0).reshape(B, _H3, _W3, 8)

    # ---- conv4 (stride 1) ----
    c4 = jnp.concatenate(
        [a3[:, kh:kh + _H4, kw:kw + _W4, :] for kh in range(3) for kw in range(3)],
        axis=-1).reshape(B * _H4 * _W4, 72)                   # [B*12, 72]
    z4 = mxu(c4, w4p_ref[...])
    a4 = jnp.maximum(z4 * s4_ref[...] + b4_ref[...], 0.0)     # [B*12, 16]

    # ---- dueling head, batched ----
    # feats[b, s*16 + c] = a4[b*12 + s, c]; wh1 rows are pre-permuted to this
    # (spatial s, channel c) order with state on lanes 0..63, advantage 64..127.
    S = _H4 * _W4
    a4r = a4.reshape(B, S, 16)                                # lane dim unchanged
    feats = jnp.concatenate([a4r[:, s, :] for s in range(S)], axis=-1)   # [B, 192]
    h = jnp.maximum(mxu(feats, wh1_ref[...]) + bh1_ref[...], 0.0)        # [B, 128]
    o = mxu(h, wh2_ref[...]) + bh2_ref[...]                              # [B, 1+A]
    v = o[:, 0:1]
    adv = o[:, 1:]
    o_ref[...] = v + (adv - jnp.mean(adv, axis=1, keepdims=True))        # [B, A]


# ----------------------------------------------------------------------------
# Wrapper-side glue
# ----------------------------------------------------------------------------
def _conv12_patches(x_nchw):
    """Composed im2col of conv1∘conv2 as a single [B*60, 81] slab.

    Column order is t*9 + u with t = conv2 tap (kh2*3+kw2), u = conv1 tap
    (kh1*3+kw1); value = x[b, 0, 4*ho2 + 2*kh2 + kh1, 4*wo2 + 2*kw2 + kw1].
    Built from one dense 7x7 / stride-4 patch extraction (a single XLA conv,
    Cin=1 so patch channels are row-major over (dh, dw)) plus a static gather
    that expands the 49 distinct pixels to the 81 (t, u) pairs.
    """
    B = x_nchw.shape[0]
    p49 = jax.lax.conv_general_dilated_patches(
        x_nchw, filter_shape=(7, 7), window_strides=(4, 4), padding="VALID")
    # p49: [B, 49, 6, 10] with channel index dh*7 + dw.
    idx = jnp.asarray(
        [(2 * kh2 + kh1) * 7 + (2 * kw2 + kw1)
         for kh2 in range(3) for kw2 in range(3)
         for kh1 in range(3) for kw1 in range(3)], jnp.int32)
    p81 = jnp.transpose(p49[:, idx, :, :], (0, 2, 3, 1))       # [B, 6, 10, 81]
    return p81.reshape(B * _H2 * _W2, 81)


_VMEM = pl.BlockSpec(memory_space=pltpu.MemorySpace.VMEM)


@jax.jit
def dqn_forward(packed, x_nchw):
    B = x_nchw.shape[0]
    patches = _conv12_patches(x_nchw.astype(jnp.float32))
    n_actions = packed["wh2"].shape[1] - 1
    args = (patches,
            packed["w1b"], packed["bn1s"], packed["bn1b"],
            packed["w2s"], packed["bn2s"], packed["bn2b"],
            packed["w3p"], packed["bn3s"], packed["bn3b"],
            packed["w4p"], packed["bn4s"], packed["bn4b"],
            packed["wh1"], packed["bh1"], packed["wh2"], packed["bh2"])
    # TODO(synk): for large batches, tile over batch with a grid (parallel
    # semantics + vmem_limit_bytes) to use both v7x TensorCores and bound VMEM;
    # gridless is the right shape at toy batch sizes.
    return pl.pallas_call(
        dqn_fused_kernel,
        out_shape=jax.ShapeDtypeStruct((B, n_actions), jnp.float32),
        in_specs=[_VMEM] * len(args),
        out_specs=_VMEM,
    )(*args)


# ----------------------------------------------------------------------------
# Parameter init (deterministic, synthetic) + packing to kernel layout
# ----------------------------------------------------------------------------
def init_params(key, n_avail_actions):
    eps = 1e-5
    conv_defs = [(1, 8), (8, 8), (8, 8), (8, 16)]      # (Cin, Cout)
    keys = jax.random.split(key, 3 * len(conv_defs) + 8)
    params = {}
    for i, (cin, cout) in enumerate(conv_defs):
        kw_, kg, kb = keys[3 * i], keys[3 * i + 1], keys[3 * i + 2]
        # Conv weight stored HWIO: [kh, kw, cin, cout] (a PyTorch checkpoint
        # would need a [cout, cin, kh, kw] -> [kh, kw, cin, cout] permute).
        params[f"conv{i + 1}_w"] = 0.1 * jax.random.normal(
            kw_, (3, 3, cin, cout), jnp.float32)
        gamma = 1.0 + 0.1 * jax.random.normal(kg, (cout,), jnp.float32)
        beta = 0.1 * jax.random.normal(kb, (cout,), jnp.float32)
        running_mean = jnp.zeros((cout,), jnp.float32)
        running_var = jnp.ones((cout,), jnp.float32)
        scale = gamma / jnp.sqrt(running_var + eps)
        bias = beta - running_mean * scale
        params[f"bn{i + 1}_scale"] = scale.reshape(1, cout)
        params[f"bn{i + 1}_bias"] = bias.reshape(1, cout)

    hk = keys[3 * len(conv_defs):]
    # Linear weights stored [in, out] (PyTorch's [out, in] would be transposed).
    params["state_w1"] = 0.1 * jax.random.normal(hk[0], (96, 64), jnp.float32)
    params["state_b1"] = 0.1 * jax.random.normal(hk[1], (1, 64), jnp.float32)
    params["state_w2"] = 0.1 * jax.random.normal(hk[2], (64, 1), jnp.float32)
    params["state_b2"] = 0.1 * jax.random.normal(hk[3], (1, 1), jnp.float32)
    params["adv_w1"] = 0.1 * jax.random.normal(hk[4], (96, 64), jnp.float32)
    params["adv_b1"] = 0.1 * jax.random.normal(hk[5], (1, 64), jnp.float32)
    params["adv_w2"] = 0.1 * jax.random.normal(hk[6], (64, n_avail_actions), jnp.float32)
    params["adv_b2"] = 0.1 * jax.random.normal(hk[7], (1, n_avail_actions), jnp.float32)
    return params


def pack_params(params, n_avail_actions):
    """Repack weights into the fused kernel's layout (pure weight-side glue)."""
    f32 = jnp.float32
    w1 = params["conv1_w"].reshape(9, 8)                        # Cin = 1
    packed = {
        # conv1 block-diagonal [81, 72]: block t (rows 9t..9t+8, cols 8t..8t+7) = w1.
        "w1b": jnp.kron(jnp.eye(9, dtype=f32), w1),
        # conv2/conv3/conv4 im2col weights: row = tap*Cin + cin (HWIO flatten).
        "w2s": params["conv2_w"].reshape(72, 8),
        "w3p": params["conv3_w"].reshape(72, 8),
        "w4p": params["conv4_w"].reshape(72, 16),
        # BN1 scale/bias pre-tiled to 72 lanes (per-tap copy of the 8 channels).
        "bn1s": jnp.tile(params["bn1_scale"], (1, 9)),
        "bn1b": jnp.tile(params["bn1_bias"], (1, 9)),
        "bn2s": params["bn2_scale"], "bn2b": params["bn2_bias"],
        "bn3s": params["bn3_scale"], "bn3b": params["bn3_bias"],
        "bn4s": params["bn4_scale"], "bn4b": params["bn4_bias"],
    }

    # Dueling head, block-diagonal and permuted to (spatial s, channel c) order:
    # PyTorch feature index is c*12 + s (channel-major flatten of [16, 2, 6]);
    # the kernel's feats columns are s*16 + c, with state on lanes 0..63
    # (channels 0..7) and advantage on lanes 64..127 (channels 8..15).
    s_blk = _H4 * _W4                                            # 12
    sw1 = jnp.transpose(params["state_w1"].reshape(8, s_blk, 64), (1, 0, 2))
    aw1 = jnp.transpose(params["adv_w1"].reshape(8, s_blk, 64), (1, 0, 2))
    zero = jnp.zeros((s_blk, 8, 64), f32)
    wh1 = jnp.concatenate(
        [jnp.concatenate([sw1, zero], axis=-1),                  # channels 0..7  (state)
         jnp.concatenate([zero, aw1], axis=-1)],                 # channels 8..15 (advantage)
        axis=1)                                                  # [12, 16, 128]
    packed["wh1"] = wh1.reshape(s_blk * 16, 128)                 # row = s*16 + c
    packed["bh1"] = jnp.concatenate(
        [params["state_b1"], params["adv_b1"]], axis=1)          # [1, 128]
    packed["wh2"] = jnp.concatenate(
        [jnp.concatenate([params["state_w2"],
                          jnp.zeros((64, n_avail_actions), f32)], axis=1),
         jnp.concatenate([jnp.zeros((64, 1), f32),
                          params["adv_w2"]], axis=1)],
        axis=0)                                                  # [128, 1 + A]
    packed["bh2"] = jnp.concatenate(
        [params["state_b2"], params["adv_b2"]], axis=1)          # [1, 1 + A]
    return packed


if __name__ == "__main__":
    n_avail_actions = 4
    batch = 2
    key = jax.random.PRNGKey(0)
    k_param, k_x = jax.random.split(key)

    params = init_params(k_param, n_avail_actions)
    packed = pack_params(params, n_avail_actions)

    # Input spatial size 30x45 so that the conv stack yields 16x2x6 = 192 feats
    # (as required by x.view(-1, 192)).
    x = jax.random.uniform(k_x, (batch, 1, 30, 45), jnp.float32)

    out = dqn_forward(packed, x)
    out = jax.block_until_ready(out)
    assert out.shape == (batch, n_avail_actions), out.shape
    assert out.dtype == jnp.float32
    print("KERNEL_OK")
</pallas_src>

<mosaic_0001>
module attributes {stable_mosaic.version = 11 : i64} {
  func.func @dqn_fused_kernel(%arg0: memref<120x81xf32, #tpu.memory_space<vmem>>, %arg1: memref<81x72xf32, #tpu.memory_space<vmem>>, %arg2: memref<1x72xf32, #tpu.memory_space<vmem>>, %arg3: memref<1x72xf32, #tpu.memory_space<vmem>>, %arg4: memref<72x8xf32, #tpu.memory_space<vmem>>, %arg5: memref<1x8xf32, #tpu.memory_space<vmem>>, %arg6: memref<1x8xf32, #tpu.memory_space<vmem>>, %arg7: memref<72x8xf32, #tpu.memory_space<vmem>>, %arg8: memref<1x8xf32, #tpu.memory_space<vmem>>, %arg9: memref<1x8xf32, #tpu.memory_space<vmem>>, %arg10: memref<72x16xf32, #tpu.memory_space<vmem>>, %arg11: memref<1x16xf32, #tpu.memory_space<vmem>>, %arg12: memref<1x16xf32, #tpu.memory_space<vmem>>, %arg13: memref<192x128xf32, #tpu.memory_space<vmem>>, %arg14: memref<1x128xf32, #tpu.memory_space<vmem>>, %arg15: memref<128x5xf32, #tpu.memory_space<vmem>>, %arg16: memref<1x5xf32, #tpu.memory_space<vmem>>, %arg17: memref<2x4xf32, #tpu.memory_space<vmem>>) attributes {dimension_semantics = [], scalar_prefetch = 0 : i64, scratch_operands = 0 : i64, tpu.core_type = #tpu.core_type<tc>} {
    %c0 = arith.constant 0 : index
    %c0_0 = arith.constant 0 : index
    %0 = vector.load %arg0[%c0, %c0_0] : memref<120x81xf32, #tpu.memory_space<vmem>>, vector<120x81xf32>
    %c0_1 = arith.constant 0 : index
    %c0_2 = arith.constant 0 : index
    %1 = vector.load %arg1[%c0_1, %c0_2] : memref<81x72xf32, #tpu.memory_space<vmem>>, vector<81x72xf32>
    %2 = arith.truncf %0 : vector<120x81xf32> to vector<120x81xbf16>
    %3 = arith.truncf %1 : vector<81x72xf32> to vector<81x72xbf16>
    %cst = arith.constant dense<0.000000e+00> : vector<120x72xf32>
    %4 = tpu.matmul %2, %3, %cst {dimension_numbers = #tpu.dot_dimension_numbers<[1], [0], [0], [1], [0, 0, 1, 1], [], []>} : vector<120x81xbf16>, vector<81x72xbf16>, vector<120x72xf32> -> vector<120x72xf32>
    %c0_3 = arith.constant 0 : index
    %c0_4 = arith.constant 0 : index
    %5 = vector.load %arg2[%c0_3, %c0_4] : memref<1x72xf32, #tpu.memory_space<vmem>>, vector<1x72xf32>
    %6 = vector.broadcast %5 : vector<1x72xf32> to vector<120x72xf32>
    %7 = arith.mulf %4, %6 : vector<120x72xf32>
    %c0_5 = arith.constant 0 : index
    %c0_6 = arith.constant 0 : index
    %8 = vector.load %arg3[%c0_5, %c0_6] : memref<1x72xf32, #tpu.memory_space<vmem>>, vector<1x72xf32>
    %9 = vector.broadcast %8 : vector<1x72xf32> to vector<120x72xf32>
    %10 = arith.addf %7, %9 : vector<120x72xf32>
    %cst_7 = arith.constant 0.000000e+00 : f32
    %11 = vector.broadcast %cst_7 : f32 to vector<120x72xf32>
    %12 = arith.maximumf %10, %11 : vector<120x72xf32>
    %c0_8 = arith.constant 0 : index
    %c0_9 = arith.constant 0 : index
    %13 = vector.load %arg4[%c0_8, %c0_9] : memref<72x8xf32, #tpu.memory_space<vmem>>, vector<72x8xf32>
    %14 = arith.truncf %12 : vector<120x72xf32> to vector<120x72xbf16>
    %15 = arith.truncf %13 : vector<72x8xf32> to vector<72x8xbf16>
    %cst_10 = arith.constant dense<0.000000e+00> : vector<120x8xf32>
    %16 = tpu.matmul %14, %15, %cst_10 {dimension_numbers = #tpu.dot_dimension_numbers<[1], [0], [0], [1], [0, 0, 1, 1], [], []>} : vector<120x72xbf16>, vector<72x8xbf16>, vector<120x8xf32> -> vector<120x8xf32>
    %c0_11 = arith.constant 0 : index
    %c0_12 = arith.constant 0 : index
    %17 = vector.load %arg5[%c0_11, %c0_12] : memref<1x8xf32, #tpu.memory_space<vmem>>, vector<1x8xf32>
    %18 = vector.broadcast %17 : vector<1x8xf32> to vector<120x8xf32>
    %19 = arith.mulf %16, %18 : vector<120x8xf32>
    %c0_13 = arith.constant 0 : index
    %c0_14 = arith.constant 0 : index
    %20 = vector.load %arg6[%c0_13, %c0_14] : memref<1x8xf32, #tpu.memory_space<vmem>>, vector<1x8xf32>
    %21 = vector.broadcast %20 : vector<1x8xf32> to vector<120x8xf32>
    %22 = arith.addf %19, %21 : vector<120x8xf32>
    %cst_15 = arith.constant 0.000000e+00 : f32
    %23 = vector.broadcast %cst_15 : f32 to vector<120x8xf32>
    %24 = arith.maximumf %22, %23 : vector<120x8xf32>
    %25 = vector.shape_cast %24 : vector<120x8xf32> to vector<2x6x10x8xf32>
    %26 = vector.extract_strided_slice %25 {offsets = [0, 0, 0, 0], sizes = [2, 4, 8, 8], strides = [1, 1, 1, 1]} : vector<2x6x10x8xf32> to vector<2x4x8x8xf32>
    %27 = vector.extract_strided_slice %25 {offsets = [0, 0, 1, 0], sizes = [2, 4, 8, 8], strides = [1, 1, 1, 1]} : vector<2x6x10x8xf32> to vector<2x4x8x8xf32>
    %28 = vector.extract_strided_slice %25 {offsets = [0, 0, 2, 0], sizes = [2, 4, 8, 8], strides = [1, 1, 1, 1]} : vector<2x6x10x8xf32> to vector<2x4x8x8xf32>
    %29 = vector.extract_strided_slice %25 {offsets = [0, 1, 0, 0], sizes = [2, 4, 8, 8], strides = [1, 1, 1, 1]} : vector<2x6x10x8xf32> to vector<2x4x8x8xf32>
    %30 = vector.extract_strided_slice %25 {offsets = [0, 1, 1, 0], sizes = [2, 4, 8, 8], strides = [1, 1, 1, 1]} : vector<2x6x10x8xf32> to vector<2x4x8x8xf32>
    %31 = vector.extract_strided_slice %25 {offsets = [0, 1, 2, 0], sizes = [2, 4, 8, 8], strides = [1, 1, 1, 1]} : vector<2x6x10x8xf32> to vector<2x4x8x8xf32>
    %32 = vector.extract_strided_slice %25 {offsets = [0, 2, 0, 0], sizes = [2, 4, 8, 8], strides = [1, 1, 1, 1]} : vector<2x6x10x8xf32> to vector<2x4x8x8xf32>
    %33 = vector.extract_strided_slice %25 {offsets = [0, 2, 1, 0], sizes = [2, 4, 8, 8], strides = [1, 1, 1, 1]} : vector<2x6x10x8xf32> to vector<2x4x8x8xf32>
    %34 = vector.extract_strided_slice %25 {offsets = [0, 2, 2, 0], sizes = [2, 4, 8, 8], strides = [1, 1, 1, 1]} : vector<2x6x10x8xf32> to vector<2x4x8x8xf32>
    %35 = tpu.concatenate %26, %27, %28, %29, %30, %31, %32, %33, %34 in 3 : vector<2x4x8x8xf32>, vector<2x4x8x8xf32>, vector<2x4x8x8xf32>, vector<2x4x8x8xf32>, vector<2x4x8x8xf32>, vector<2x4x8x8xf32>, vector<2x4x8x8xf32>, vector<2x4x8x8xf32>, vector<2x4x8x8xf32> -> vector<2x4x8x72xf32>
    %36 = vector.shape_cast %35 : vector<2x4x8x72xf32> to vector<64x72xf32>
    %c0_16 = arith.constant 0 : index
    %c0_17 = arith.constant 0 : index
    %37 = vector.load %arg7[%c0_16, %c0_17] : memref<72x8xf32, #tpu.memory_space<vmem>>, vector<72x8xf32>
    %38 = arith.truncf %36 : vector<64x72xf32> to vector<64x72xbf16>
    %39 = arith.truncf %37 : vector<72x8xf32> to vector<72x8xbf16>
    %cst_18 = arith.constant dense<0.000000e+00> : vector<64x8xf32>
    %40 = tpu.matmul %38, %39, %cst_18 {dimension_numbers = #tpu.dot_dimension_numbers<[1], [0], [0], [1], [0, 0, 1, 1], [], []>} : vector<64x72xbf16>, vector<72x8xbf16>, vector<64x8xf32> -> vector<64x8xf32>
    %c0_19 = arith.constant 0 : index
    %c0_20 = arith.constant 0 : index
    %41 = vector.load %arg8[%c0_19, %c0_20] : memref<1x8xf32, #tpu.memory_space<vmem>>, vector<1x8xf32>
    %42 = vector.broadcast %41 : vector<1x8xf32> to vector<64x8xf32>
    %43 = arith.mulf %40, %42 : vector<64x8xf32>
    %c0_21 = arith.constant 0 : index
    %c0_22 = arith.constant 0 : index
    %44 = vector.load %arg9[%c0_21, %c0_22] : memref<1x8xf32, #tpu.memory_space<vmem>>, vector<1x8xf32>
    %45 = vector.broadcast %44 : vector<1x8xf32> to vector<64x8xf32>
    %46 = arith.addf %43, %45 : vector<64x8xf32>
    %cst_23 = arith.constant 0.000000e+00 : f32
    %47 = vector.broadcast %cst_23 : f32 to vector<64x8xf32>
    %48 = arith.maximumf %46, %47 : vector<64x8xf32>
    %49 = vector.shape_cast %48 : vector<64x8xf32> to vector<2x4x8x8xf32>
    %50 = vector.extract_strided_slice %49 {offsets = [0, 0, 0, 0], sizes = [2, 2, 6, 8], strides = [1, 1, 1, 1]} : vector<2x4x8x8xf32> to vector<2x2x6x8xf32>
    %51 = vector.extract_strided_slice %49 {offsets = [0, 0, 1, 0], sizes = [2, 2, 6, 8], strides = [1, 1, 1, 1]} : vector<2x4x8x8xf32> to vector<2x2x6x8xf32>
    %52 = vector.extract_strided_slice %49 {offsets = [0, 0, 2, 0], sizes = [2, 2, 6, 8], strides = [1, 1, 1, 1]} : vector<2x4x8x8xf32> to vector<2x2x6x8xf32>
    %53 = vector.extract_strided_slice %49 {offsets = [0, 1, 0, 0], sizes = [2, 2, 6, 8], strides = [1, 1, 1, 1]} : vector<2x4x8x8xf32> to vector<2x2x6x8xf32>
    %54 = vector.extract_strided_slice %49 {offsets = [0, 1, 1, 0], sizes = [2, 2, 6, 8], strides = [1, 1, 1, 1]} : vector<2x4x8x8xf32> to vector<2x2x6x8xf32>
    %55 = vector.extract_strided_slice %49 {offsets = [0, 1, 2, 0], sizes = [2, 2, 6, 8], strides = [1, 1, 1, 1]} : vector<2x4x8x8xf32> to vector<2x2x6x8xf32>
    %56 = vector.extract_strided_slice %49 {offsets = [0, 2, 0, 0], sizes = [2, 2, 6, 8], strides = [1, 1, 1, 1]} : vector<2x4x8x8xf32> to vector<2x2x6x8xf32>
    %57 = vector.extract_strided_slice %49 {offsets = [0, 2, 1, 0], sizes = [2, 2, 6, 8], strides = [1, 1, 1, 1]} : vector<2x4x8x8xf32> to vector<2x2x6x8xf32>
    %58 = vector.extract_strided_slice %49 {offsets = [0, 2, 2, 0], sizes = [2, 2, 6, 8], strides = [1, 1, 1, 1]} : vector<2x4x8x8xf32> to vector<2x2x6x8xf32>
    %59 = tpu.concatenate %50, %51, %52, %53, %54, %55, %56, %57, %58 in 3 : vector<2x2x6x8xf32>, vector<2x2x6x8xf32>, vector<2x2x6x8xf32>, vector<2x2x6x8xf32>, vector<2x2x6x8xf32>, vector<2x2x6x8xf32>, vector<2x2x6x8xf32>, vector<2x2x6x8xf32>, vector<2x2x6x8xf32> -> vector<2x2x6x72xf32>
    %60 = vector.shape_cast %59 : vector<2x2x6x72xf32> to vector<24x72xf32>
    %c0_24 = arith.constant 0 : index
    %c0_25 = arith.constant 0 : index
    %61 = vector.load %arg10[%c0_24, %c0_25] : memref<72x16xf32, #tpu.memory_space<vmem>>, vector<72x16xf32>
    %62 = arith.truncf %60 : vector<24x72xf32> to vector<24x72xbf16>
    %63 = arith.truncf %61 : vector<72x16xf32> to vector<72x16xbf16>
    %cst_26 = arith.constant dense<0.000000e+00> : vector<24x16xf32>
    %64 = tpu.matmul %62, %63, %cst_26 {dimension_numbers = #tpu.dot_dimension_numbers<[1], [0], [0], [1], [0, 0, 1, 1], [], []>} : vector<24x72xbf16>, vector<72x16xbf16>, vector<24x16xf32> -> vector<24x16xf32>
    %c0_27 = arith.constant 0 : index
    %c0_28 = arith.constant 0 : index
    %65 = vector.load %arg11[%c0_27, %c0_28] : memref<1x16xf32, #tpu.memory_space<vmem>>, vector<1x16xf32>
    %66 = vector.broadcast %65 : vector<1x16xf32> to vector<24x16xf32>
    %67 = arith.mulf %64, %66 : vector<24x16xf32>
    %c0_29 = arith.constant 0 : index
    %c0_30 = arith.constant 0 : index
    %68 = vector.load %arg12[%c0_29, %c0_30] : memref<1x16xf32, #tpu.memory_space<vmem>>, vector<1x16xf32>
    %69 = vector.broadcast %68 : vector<1x16xf32> to vector<24x16xf32>
    %70 = arith.addf %67, %69 : vector<24x16xf32>
    %cst_31 = arith.constant 0.000000e+00 : f32
    %71 = vector.broadcast %cst_31 : f32 to vector<24x16xf32>
    %72 = arith.maximumf %70, %71 : vector<24x16xf32>
    %73 = vector.shape_cast %72 : vector<24x16xf32> to vector<2x12x16xf32>
    %74 = vector.extract_strided_slice %73 {offsets = [0, 0, 0], sizes = [2, 1, 16], strides = [1, 1, 1]} : vector<2x12x16xf32> to vector<2x1x16xf32>
    %75 = vector.shape_cast %74 : vector<2x1x16xf32> to vector<2x16xf32>
    %76 = vector.extract_strided_slice %73 {offsets = [0, 1, 0], sizes = [2, 1, 16], strides = [1, 1, 1]} : vector<2x12x16xf32> to vector<2x1x16xf32>
    %77 = vector.shape_cast %76 : vector<2x1x16xf32> to vector<2x16xf32>
    %78 = vector.extract_strided_slice %73 {offsets = [0, 2, 0], sizes = [2, 1, 16], strides = [1, 1, 1]} : vector<2x12x16xf32> to vector<2x1x16xf32>
    %79 = vector.shape_cast %78 : vector<2x1x16xf32> to vector<2x16xf32>
    %80 = vector.extract_strided_slice %73 {offsets = [0, 3, 0], sizes = [2, 1, 16], strides = [1, 1, 1]} : vector<2x12x16xf32> to vector<2x1x16xf32>
    %81 = vector.shape_cast %80 : vector<2x1x16xf32> to vector<2x16xf32>
    %82 = vector.extract_strided_slice %73 {offsets = [0, 4, 0], sizes = [2, 1, 16], strides = [1, 1, 1]} : vector<2x12x16xf32> to vector<2x1x16xf32>
    %83 = vector.shape_cast %82 : vector<2x1x16xf32> to vector<2x16xf32>
    %84 = vector.extract_strided_slice %73 {offsets = [0, 5, 0], sizes = [2, 1, 16], strides = [1, 1, 1]} : vector<2x12x16xf32> to vector<2x1x16xf32>
    %85 = vector.shape_cast %84 : vector<2x1x16xf32> to vector<2x16xf32>
    %86 = vector.extract_strided_slice %73 {offsets = [0, 6, 0], sizes = [2, 1, 16], strides = [1, 1, 1]} : vector<2x12x16xf32> to vector<2x1x16xf32>
    %87 = vector.shape_cast %86 : vector<2x1x16xf32> to vector<2x16xf32>
    %88 = vector.extract_strided_slice %73 {offsets = [0, 7, 0], sizes = [2, 1, 16], strides = [1, 1, 1]} : vector<2x12x16xf32> to vector<2x1x16xf32>
    %89 = vector.shape_cast %88 : vector<2x1x16xf32> to vector<2x16xf32>
    %90 = vector.extract_strided_slice %73 {offsets = [0, 8, 0], sizes = [2, 1, 16], strides = [1, 1, 1]} : vector<2x12x16xf32> to vector<2x1x16xf32>
    %91 = vector.shape_cast %90 : vector<2x1x16xf32> to vector<2x16xf32>
    %92 = vector.extract_strided_slice %73 {offsets = [0, 9, 0], sizes = [2, 1, 16], strides = [1, 1, 1]} : vector<2x12x16xf32> to vector<2x1x16xf32>
    %93 = vector.shape_cast %92 : vector<2x1x16xf32> to vector<2x16xf32>
    %94 = vector.extract_strided_slice %73 {offsets = [0, 10, 0], sizes = [2, 1, 16], strides = [1, 1, 1]} : vector<2x12x16xf32> to vector<2x1x16xf32>
    %95 = vector.shape_cast %94 : vector<2x1x16xf32> to vector<2x16xf32>
    %96 = vector.extract_strided_slice %73 {offsets = [0, 11, 0], sizes = [2, 1, 16], strides = [1, 1, 1]} : vector<2x12x16xf32> to vector<2x1x16xf32>
    %97 = vector.shape_cast %96 : vector<2x1x16xf32> to vector<2x16xf32>
    %98 = tpu.concatenate %75, %77, %79, %81, %83, %85, %87, %89, %91, %93, %95, %97 in 1 : vector<2x16xf32>, vector<2x16xf32>, vector<2x16xf32>, vector<2x16xf32>, vector<2x16xf32>, vector<2x16xf32>, vector<2x16xf32>, vector<2x16xf32>, vector<2x16xf32>, vector<2x16xf32>, vector<2x16xf32>, vector<2x16xf32> -> vector<2x192xf32>
    %c0_32 = arith.constant 0 : index
    %c0_33 = arith.constant 0 : index
    %99 = vector.load %arg13[%c0_32, %c0_33] : memref<192x128xf32, #tpu.memory_space<vmem>>, vector<192x128xf32>
    %100 = arith.truncf %98 : vector<2x192xf32> to vector<2x192xbf16>
    %101 = arith.truncf %99 : vector<192x128xf32> to vector<192x128xbf16>
    %cst_34 = arith.constant dense<0.000000e+00> : vector<2x128xf32>
    %102 = tpu.matmul %100, %101, %cst_34 {dimension_numbers = #tpu.dot_dimension_numbers<[1], [0], [0], [1], [0, 0, 1, 1], [], []>} : vector<2x192xbf16>, vector<192x128xbf16>, vector<2x128xf32> -> vector<2x128xf32>
    %c0_35 = arith.constant 0 : index
    %c0_36 = arith.constant 0 : index
    %103 = vector.load %arg14[%c0_35, %c0_36] : memref<1x128xf32, #tpu.memory_space<vmem>>, vector<1x128xf32>
    %104 = vector.broadcast %103 : vector<1x128xf32> to vector<2x128xf32>
    %105 = arith.addf %102, %104 : vector<2x128xf32>
    %cst_37 = arith.constant 0.000000e+00 : f32
    %106 = vector.broadcast %cst_37 : f32 to vector<2x128xf32>
    %107 = arith.maximumf %105, %106 : vector<2x128xf32>
    %c0_38 = arith.constant 0 : index
    %c0_39 = arith.constant 0 : index
    %108 = vector.load %arg15[%c0_38, %c0_39] : memref<128x5xf32, #tpu.memory_space<vmem>>, vector<128x5xf32>
    %109 = arith.truncf %107 : vector<2x128xf32> to vector<2x128xbf16>
    %110 = arith.truncf %108 : vector<128x5xf32> to vector<128x5xbf16>
    %cst_40 = arith.constant dense<0.000000e+00> : vector<2x5xf32>
    %111 = tpu.matmul %109, %110, %cst_40 {dimension_numbers = #tpu.dot_dimension_numbers<[1], [0], [0], [1], [0, 0, 1, 1], [], []>} : vector<2x128xbf16>, vector<128x5xbf16>, vector<2x5xf32> -> vector<2x5xf32>
    %c0_41 = arith.constant 0 : index
    %c0_42 = arith.constant 0 : index
    %112 = vector.load %arg16[%c0_41, %c0_42] : memref<1x5xf32, #tpu.memory_space<vmem>>, vector<1x5xf32>
    %113 = vector.broadcast %112 : vector<1x5xf32> to vector<2x5xf32>
    %114 = arith.addf %111, %113 : vector<2x5xf32>
    %115 = vector.extract_strided_slice %114 {offsets = [0, 0], sizes = [2, 1], strides = [1, 1]} : vector<2x5xf32> to vector<2x1xf32>
    %116 = vector.extract_strided_slice %114 {offsets = [0, 1], sizes = [2, 4], strides = [1, 1]} : vector<2x5xf32> to vector<2x4xf32>
    %cst_43 = arith.constant dense<0.000000e+00> : vector<2xf32>
    %117 = vector.multi_reduction <add>, %116, %cst_43 [1] : vector<2x4xf32> to vector<2xf32>
    %118 = vector.shape_cast %117 : vector<2xf32> to vector<2x1xf32>
    %cst_44 = arith.constant 4.000000e+00 : f32
    %119 = vector.broadcast %cst_44 : f32 to vector<2x1xf32>
    %120 = arith.divf %118, %119 : vector<2x1xf32>
    %121 = vector.broadcast %120 : vector<2x1xf32> to vector<2x4xf32>
    %122 = arith.subf %116, %121 : vector<2x4xf32>
    %123 = vector.broadcast %115 : vector<2x1xf32> to vector<2x4xf32>
    %124 = arith.addf %123, %122 : vector<2x4xf32>
    %c0_45 = arith.constant 0 : index
    %c0_46 = arith.constant 0 : index
    %125 = vector.load %arg17[%c0_45, %c0_46] : memref<2x4xf32, #tpu.memory_space<vmem>>, vector<2x4xf32>
    tpu.vector_store %arg17[%c0_45, %c0_46], %124 {strides = array<i32>} : memref<2x4xf32, #tpu.memory_space<vmem>>, vector<2x4xf32>,
    return
  }
}

</mosaic_0001>

<bundles_post_ra>
// kernel: dqn_forward.1
= control target key start
LH: loop header
LB: loop body
LE: loop exit
PB: predicated region body
PF: predicated region fallthrough
CT: control target
= control target key end

     0   :  { %s4174_s0 = inlined_call_operand.vmem [shape: f32[120,81], index: 0, kind: input, shape index: {}]   ;;  %s4175_s1 = inlined_call_operand.vmem [shape: f32[81,72], index: 1, kind: input, shape index: {}]   ;;  %s4176_s2 = inlined_call_operand.vmem [shape: f32[1,72], index: 2, kind: input, shape index: {}]   ;;  %s4177_s3 = inlined_call_operand.vmem [shape: f32[1,72], index: 3, kind: input, shape index: {}]   ;;  %s4178_s4 = inlined_call_operand.vmem [shape: f32[72,8], index: 4, kind: input, shape index: {}]   ;;  %s4179_s5 = inlined_call_operand.vmem [shape: f32[1,8], index: 5, kind: input, shape index: {}]   ;;  %s4180_s6 = inlined_call_operand.vmem [shape: f32[1,8], index: 6, kind: input, shape index: {}]   ;;  %s4181_s7 = inlined_call_operand.vmem [shape: f32[72,8], index: 7, kind: input, shape index: {}]   ;;  %s4182_s8 = inlined_call_operand.vmem [shape: f32[1,8], index: 8, kind: input, shape index: {}]   ;;  %s4183_s9 = inlined_call_operand.vmem [shape: f32[1,8], index: 9, kind: input, shape index: {}]   ;;  %s4184_s10 = inlined_call_operand.vmem [shape: f32[72,16], index: 10, kind: input, shape index: {}]   ;;  %s4185_s11 = inlined_call_operand.vmem [shape: f32[1,16], index: 11, kind: input, shape index: {}]   ;;  %s4186_s12 = inlined_call_operand.vmem [shape: f32[1,16], index: 12, kind: input, shape index: {}]   ;;  %s4187_s13 = inlined_call_operand.vmem [shape: f32[192,128], index: 13, kind: input, shape index: {}]   ;;  %s4188_s14 = inlined_call_operand.vmem [shape: f32[1,128], index: 14, kind: input, shape index: {}]   ;;  %s4189_s15 = inlined_call_operand.vmem [shape: f32[128,5], index: 15, kind: input, shape index: {}]   ;;  %s4190_s16 = inlined_call_operand.vmem [shape: f32[1,5], index: 16, kind: input, shape index: {}]   ;;  %s4191_s17 = inlined_call_operand.hbm [shape: f32[2,4], index: 17, kind: output, shape index: {}]  }
   0x1   :  { %4196 = sst [smem:[#allocation5_spill]] %s4174_s0 }
   0x2   :  { %4197 = sst [smem:[#allocation6_spill]] %s4175_s1 }
   0x3   :  { %s4198_s26 = sld [smem:[#allocation6_spill]]  ;;  %vm123_vm0 = vcmask 1040384   ;;  %v4194_v4 = vmov 0   ;;  %vm98_vm1 = vcmask 662528   ;;  %v292_v16 = vld [vmem:[%s4178_s4 + $0x40] sm:$0xff]  ;;  %vm331_vm2 = vcmask 1043456  }
   0x4   :  { %v125_v5 = vsel %vm123_vm0, 65535, %v4194_v4  ;;  %2804 = vset.pattern.permute.xlu0 %v4194_v4  ;;  %s4199_s19 = sld [smem:[#allocation5_spill]]  ;;  %v305_v17 = vpack.c.bf16 %v292_v16, %v292_v16 }
   0x9   :  { %v83_v0 = vld [vmem:[%s4198_s26 + $0x50] sm:$0x1]  ;;  %v81_v1 = vld [vmem:[%s4198_s26 + $0x40] sm:$0xff]  ;;  %v82_v2 = vld [vmem:[%s4198_s26 + $0x48] sm:$0xff] }
   0xa   :  { %v97_v3 = vpack.c.bf16 %v83_v0, %v83_v0  ;;  %v96_v7 = vpack.c.bf16 %v82_v2, %v81_v1  ;;  %v58_v8 = vld [vmem:[%s4199_s19] sm:$0xff]  ;;  %v79_v9 = vld [vmem:[%s4198_s26 + $0x30] sm:$0xff]  ;;  %v80_v10 = vld [vmem:[%s4198_s26 + $0x38] sm:$0xff] }
   0xb   :  { %v59_v11 = vld [vmem:[%s4199_s19 + $0x8] sm:$0xff]  ;;  %v95_v13 = vpack.c.bf16 %v80_v10, %v79_v9  ;;  %v77_v14 = vld [vmem:[%s4198_s26 + $0x20] sm:$0xff] }
   0xc   :  { %v127_v6 = vand.u32 %v125_v5, %v97_v3  ;;  %v84_v12 = vpack.c.bf16 %v59_v11, %v58_v8  ;;  %v78_v15 = vld [vmem:[%s4198_s26 + $0x28] sm:$0xff] }
   0xe   :  { %2508 = vmatprep.subr.bf16.mxu0 %v127_v6  ;;  %2520 = vmatprep.mubr.msk.bf16.mxu0 %vm98_vm1, %v84_v12 }
   0xf   :  { %2509 = vmatpush3.bf16.msra.mxu0 %v127_v6 }
  0x10   :  { %2510 = vmatprep.subr.bf16.mxu0 %v96_v7 }
  0x11   :  { %22 = vsyncpa [#allocation3], 0  ;;  %v94_v18 = vpack.c.bf16 %v78_v15, %v77_v14  ;;  %2614 = vmatprep.subr.msk.bf16.mxu1 %vm331_vm2, %v305_v17  ;;  %v333_v19 = vsel %vm331_vm2, %v305_v17, 0  ;;  %v75_v20 = vld [vmem:[%s4198_s26 + $0x10] sm:$0xff]  ;;  %v76_v21 = vld [vmem:[%s4198_s26 + $0x18] sm:$0xff]  ;;  %vm306_vm3 = vcmask 588800  }
  0x12   :  { %2537 = vmatpush3.bf16.msra.mxu1 %v333_v19  ;;  %v93_v22 = vpack.c.bf16 %v76_v21, %v75_v20  ;;  %v73_v23 = vld [vmem:[%s4198_s26] sm:$0xff]  ;;  %v74_v24 = vld [vmem:[%s4198_s26 + $0x8] sm:$0xff]  ;;  %v60_v26 = vld [vmem:[%s4199_s19 + $0x10] sm:$0xff]  ;;  %vm960_vm4 = vcmask 1046528   ;;  %s2831_s30 = smov 40   ;;  %s2833_s18 = smov 8  }
  0x13   :  { %2511 = vmatpush3.bf16.msra.mxu0 %v96_v7  ;;  %v92_v25 = vpack.c.bf16 %v74_v24, %v73_v23  ;;  %v61_v27 = vld [vmem:[%s4199_s19 + $0x18] sm:$0xff]  ;;  %v62_v28 = vld [vmem:[%s4199_s19 + $0x20] sm:$0xff]  ;;  %v63_v29 = vld [vmem:[%s4199_s19 + $0x28] sm:$0xff]  ;;  %s2834_s1 = smov 32   ;;  %s2835_s20 = smov 64   ;;  %vm1489_vm5 = vcmask 64512  }
  0x14   :  { %2512 = vmatprep.subr.bf16.mxu0 %v95_v13  ;;  %v85_v30 = vpack.c.bf16 %v61_v27, %v60_v26  ;;  %v86_v31 = vpack.c.bf16 %v63_v29, %v62_v28  ;;  %v64_v32 = vld [vmem:[%s4199_s19 + $0x30] sm:$0xff]  ;;  %v65_v33 = vld [vmem:[%s4199_s19 + $0x38] sm:$0xff]  ;;  %v66_v34 = vld [vmem:[%s4199_s19 + $0x40] sm:$0xff]  ;;  %s2836_s26 = smov 56   ;;  %vm1498_vm6 = vcmask 130048   ;;  %vm1507_vm7 = vcmask 195584  }
  0x15   :  { %v67_v35 = vld [vmem:[%s4199_s19 + $0x48] sm:$0xff]  ;;  %v87_v36 = vpack.c.bf16 %v65_v33, %v64_v32  ;;  %v68_v38 = vld [vmem:[%s4199_s19 + $0x50] sm:$0xff]  ;;  %v69_v39 = vld [vmem:[%s4199_s19 + $0x58] sm:$0xff]  ;;  %vm1516_vm8 = vcmask 261120   ;;  %vm1525_vm9 = vcmask 326656   ;;  %vm1534_vm10 = vcmask 392192  }
  0x16   :  { %v88_v37 = vpack.c.bf16 %v67_v35, %v66_v34  ;;  %v70_v40 = vld [vmem:[%s4199_s19 + $0x60] sm:$0xff]  ;;  %v71_v41 = vld [vmem:[%s4199_s19 + $0x68] sm:$0xff]  ;;  %v89_v42 = vpack.c.bf16 %v69_v39, %v68_v38  ;;  %v72_v44 = vld [vmem:[%s4199_s19 + $0x70] sm:$0xff]  ;;  %s2832_s19 = smov 48   ;;  %vm1543_vm11 = vcmask 457728   ;;  %vm1552_vm12 = vcmask 523264  }
  0x17   :  { %2513 = vmatpush3.bf16.msra.mxu0 %v95_v13  ;;  %v90_v43 = vpack.c.bf16 %v71_v41, %v70_v40  ;;  %v91_v45 = vpack.c.bf16 %v72_v44, %v72_v44  ;;  %v290_v46 = vld [vmem:[%s4178_s4 + $0x30] sm:$0xff]  ;;  %v291_v47 = vld [vmem:[%s4178_s4 + $0x38] sm:$0xff]  ;;  %v288_v49 = vld [vmem:[%s4178_s4 + $0x20] sm:$0xff]  ;;  %vm2081_vm13 = vcmask 1041409   ;;  %s2837_s0 = smov 80   ;;  %vm2218_vm14 = vcmask 654336  }
  0x18   :  { %2514 = vmatprep.subr.bf16.mxu0 %v94_v18  ;;  %v304_v48 = vpack.c.bf16 %v291_v47, %v290_v46  ;;  %v289_v50 = vld [vmem:[%s4178_s4 + $0x28] sm:$0xff]  ;;  %v286_v52 = vld [vmem:[%s4178_s4 + $0x10] sm:$0xff]  ;;  %v287_v53 = vld [vmem:[%s4178_s4 + $0x18] sm:$0xff]  ;;  %vm2220_vm15 = vcmask 785408   ;;  %vm2222_vm0 = vcmask 916480   ;;  %s2842_s28 = smov 127  }
  0x19   :  { %v303_v51 = vpack.c.bf16 %v289_v50, %v288_v49  ;;  %v302_v54 = vpack.c.bf16 %v287_v53, %v286_v52  ;;  %v284_v55 = vld [vmem:[%s4178_s4] sm:$0xff]  ;;  %v285_v56 = vld [vmem:[%s4178_s4 + $0x8] sm:$0xff] }
  0x1a   :  { %2538 = vmatprep.subr.bf16.mxu1 %v304_v48  ;;  %v301_v57 = vpack.c.bf16 %v285_v56, %v284_v55  ;;  %v3054_v59 = vld [vmem:[%s4176_s2] ss:$0 sm:$0xff] }
  0x1b   :  { %2515 = vmatpush3.bf16.msra.mxu0 %v94_v18  ;;  %2539 = vmatpush3.bf16.msra.mxu1 %v304_v48  ;;  %v3061_v0 = vld [vmem:[%s4177_s3] ss:$0 sm:$0xff] }
  0x1c   :  { %2516 = vmatprep.subr.bf16.mxu0 %v93_v22  ;;  %2540 = vmatprep.subr.bf16.mxu1 %v303_v51 }
  0x1f   :  { %2517 = vmatpush3.bf16.msra.mxu0 %v93_v22  ;;  %2541 = vmatpush3.bf16.msra.mxu1 %v303_v51 }
  0x20   :  { %2518 = vmatprep.subr.bf16.mxu0 %v92_v25  ;;  %2542 = vmatprep.subr.bf16.mxu1 %v302_v54 }
  0x23   :  { %2519 = vmatpush3.bf16.msra.mxu0 %v92_v25  ;;  %2543 = vmatpush3.bf16.msra.mxu1 %v302_v54 }
  0x24   :  { %2544 = vmatprep.subr.bf16.mxu1 %v301_v57 }
  0x26   :  { %2521 = vmatmul.mubr.msk.bf16.vlgmr.msra.gmra.mxu0 %vm98_vm1, %v85_v30 }
  0x27   :  { %2524 = vmatprep.mubr.msk.bf16.mxu0 %vm98_vm1, %v86_v31  ;;  %2545 = vmatpush3.bf16.msra.mxu1 %v301_v57 }
  0x2e   :  { %2525 = vmatmul.mubr.msk.bf16.gmra.mxu0 %vm98_vm1, %v87_v36 }
  0x2f   :  { %2528 = vmatprep.mubr.msk.bf16.mxu0 %vm98_vm1, %v88_v37 }
  0x36   :  { %2529 = vmatmul.mubr.msk.bf16.gmra.mxu0 %vm98_vm1, %v89_v42 }
  0x37   :  { %2532 = vmatprep.mubr.msk.bf16.mxu0 %vm98_vm1, %v90_v43 }
  0x3e   :  { %2533 = vmatmul.mubr.msk.bf16.gmra.mxu0 %vm98_vm1, %v91_v45  ;;  %vm2841_vm1 = vmmov 0  }
  0xe6   :  { %v2522_v58 = vpop.f32.mrf.mxu0 }
  0xe7   :  { %v234_v62 = vmul.f32 %v2522_v58, %v3054_v59 }
  0xe8   :  { %v163_v60 = vpop.f32.mrf.mxu0 }
  0xe9   :  { %v232_v61 = vmul.f32 %v3054_v59, %v163_v60  ;;  %v256_v7 = vadd.f32 %v3061_v0, %v234_v62 }
  0xea   :  { %v2523_v63 = vpop.f32.mrf.mxu0 }
  0xeb   :  { %v235_v1 = vmul.f32 %v2523_v63, %v3054_v59  ;;  %v254_v3 = vadd.f32 %v3061_v0, %v232_v61  ;;  %v271_v15 = vmax.f32 %v256_v7, 0.0 }
  0xec   :  { %v166_v2 = vpop.f32.mrf.mxu0 }
  0xed   :  { %v257_v5 = vadd.f32 %v3061_v0, %v235_v1  ;;  %v233_v6 = vmul.f32 %v3054_v59, %v166_v2  ;;  %v269_v12 = vmax.f32 %v254_v3, 0.0 }
  0xee   :  { %v2526_v8 = vpop.f32.mrf.mxu0 }
  0xef   :  { %v255_v9 = vadd.f32 %v3061_v0, %v233_v6  ;;  %v272_v10 = vmax.f32 %v257_v5, 0.0  ;;  %v238_v16 = vmul.f32 %v2526_v8, %v3054_v59  ;;  %v3102_v5 = vld [vmem:[%s4179_s5] ss:$0 sm:$0xff]  ;;  %s2829_s5 = smov 16  }
  0xf0   :  { %v179_v11 = vpop.f32.mrf.mxu0 }
  0xf1   :  { %v270_v13 = vmax.f32 %v255_v9, 0.0  ;;  %v236_v14 = vmul.f32 %v3054_v59, %v179_v11  ;;  %v294_v20 = vpack.c.bf16 %v272_v10, %v271_v15  ;;  %v260_v25 = vadd.f32 %v3061_v0, %v238_v16 }
  0xf2   :  { %v2527_v17 = vpop.f32.mrf.mxu0 }
  0xf3   :  { %v239_v18 = vmul.f32 %v2527_v17, %v3054_v59  ;;  %v293_v19 = vpack.c.bf16 %v270_v13, %v269_v12  ;;  %v258_v22 = vadd.f32 %v3061_v0, %v236_v14  ;;  %v275_v34 = vmax.f32 %v260_v25, 0.0 }
  0xf4   :  { %v182_v21 = vpop.f32.mrf.mxu0  ;;  %v2828_v12 = vmov 1983009808   ;;  %v509_v14 = vlaneseq }
  0xf5   :  { %v261_v23 = vadd.f32 %v3061_v0, %v239_v18  ;;  %v237_v24 = vmul.f32 %v3054_v59, %v182_v21  ;;  %2546 = vmatprep.mubr.msk.bf16.mxu1 %vm306_vm3, %v293_v19  ;;  %v273_v31 = vmax.f32 %v258_v22, 0.0  ;;  %v507_v13 = vunpack.c.l.s4 %v2828_v12 }
  0xf6   :  { %v2530_v26 = vpop.f32.mrf.mxu0  ;;  %2547 = vmatmul.mubr.msk.bf16.vlgmr.msra.gmra.mxu1 %vm306_vm3, %v294_v20  ;;  %v3114_v21 = vshrl.u32 %v509_v14, 7 }
  0xf7   :  { %v259_v27 = vadd.f32 %v3061_v0, %v237_v24  ;;  %v242_v28 = vmul.f32 %v2530_v26, %v3054_v59  ;;  %v276_v29 = vmax.f32 %v261_v23, 0.0  ;;  %v508_v20 = vunpack.c.0.s8 %v507_v13 }
  0xf8   :  { %v195_v30 = vpop.f32.mrf.mxu0 }
  0xf9   :  { %v274_v32 = vmax.f32 %v259_v27, 0.0  ;;  %v240_v33 = vmul.f32 %v3054_v59, %v195_v30  ;;  %v264_v35 = vadd.f32 %v3061_v0, %v242_v28  ;;  %v296_v40 = vpack.c.bf16 %v276_v29, %v275_v34 }
  0xfa   :  { %v2531_v36 = vpop.f32.mrf.mxu0  ;;  %v3120_v29 = vsub.s32 %v508_v20, %v3114_v21 }
  0xfb   :  { %v295_v37 = vpack.c.bf16 %v274_v32, %v273_v31  ;;  %v262_v38 = vadd.f32 %v3061_v0, %v240_v33  ;;  %v243_v39 = vmul.f32 %v2531_v36, %v3054_v59  ;;  %v279_v44 = vmax.f32 %v264_v35, 0.0 }
  0xfc   :  { %v198_v41 = vpop.f32.mrf.mxu0 }
  0xfd   :  { %v265_v42 = vadd.f32 %v3061_v0, %v243_v39  ;;  %v241_v43 = vmul.f32 %v3054_v59, %v198_v41  ;;  %2550 = vmatprep.mubr.msk.bf16.mxu1 %vm306_vm3, %v295_v37  ;;  %v277_v46 = vmax.f32 %v262_v38, 0.0 }
  0xfe   :  { %v2534_v45 = vpop.f32.mrf.mxu0  ;;  %2551 = vmatmul.mubr.msk.bf16.gmra.mxu1 %vm306_vm3, %v296_v40 }
  0xff   :  { %v280_v47 = vmax.f32 %v265_v42, 0.0  ;;  %v263_v48 = vadd.f32 %v3061_v0, %v241_v43  ;;  %v246_v49 = vmul.f32 %v2534_v45, %v3054_v59 }
 0x100   :  { %v211_v50 = vpop.f32.mrf.mxu0 }
 0x101   :  { %v278_v51 = vmax.f32 %v263_v48, 0.0  ;;  %v244_v52 = vmul.f32 %v3054_v59, %v211_v50  ;;  %v298_v53 = vpack.c.bf16 %v280_v47, %v279_v44  ;;  %v268_v54 = vadd.f32 %v3061_v0, %v246_v49 }
 0x102   :  { %v2535_v55 = vpop.f32.mrf.mxu0 }
 0x103   :  { %v297_v56 = vpack.c.bf16 %v278_v51, %v277_v46  ;;  %v266_v57 = vadd.f32 %v3061_v0, %v244_v52  ;;  %v283_v61 = vmax.f32 %v268_v54, 0.0 }
 0x104   :  { %v214_v58 = vpop.f32.mrf.mxu0 }
 0x105   :  { %v245_v60 = vmul.f32 %v3054_v59, %v214_v58  ;;  %2554 = vmatprep.mubr.msk.bf16.mxu1 %vm306_vm3, %v297_v56  ;;  %v281_v62 = vmax.f32 %v266_v57, 0.0  ;;  %v300_v2 = vpack.c.bf16 %v283_v61, %v283_v61 }
 0x106   :  { %2555 = vmatmul.mubr.msk.bf16.gmra.mxu1 %vm306_vm3, %v298_v53 }
 0x107   :  { %v267_v63 = vadd.f32 %v3061_v0, %v245_v60  ;;  %v3108_v0 = vld [vmem:[%s4180_s6] ss:$0 sm:$0xff]  ;;  %s2830_s6 = smov 24  }
 0x109   :  { %v282_v1 = vmax.f32 %v267_v63, 0.0 }
 0x10b   :  { %v299_v3 = vpack.c.bf16 %v282_v1, %v281_v62 }
 0x10d   :  { %2558 = vmatprep.mubr.msk.bf16.mxu1 %vm306_vm3, %v299_v3 }
 0x10e   :  { %2559 = vmatmul.mubr.msk.bf16.gmra.mxu1 %vm306_vm3, %v300_v2 }
 0x1b6   :  { %v2548_v59 = vpop.f32.mrf.mxu1 }
 0x1b7   :  { %v440_v6 = vmul.f32 %v2548_v59, %v3102_v5 }
 0x1b8   :  { %v369_v7 = vpop.f32.mrf.mxu1 }
 0x1b9   :  { %v462_v9 = vadd.f32 %v3108_v0, %v440_v6  ;;  %v438_v10 = vmul.f32 %v3102_v5, %v369_v7 }
 0x1ba   :  { %v2549_v8 = vpop.f32.mrf.mxu1 }
 0x1bb   :  { %v477_v16 = vmax.f32 %v462_v9, 0.0  ;;  %v460_v17 = vadd.f32 %v3108_v0, %v438_v10  ;;  %v441_v18 = vmul.f32 %v2549_v8, %v3102_v5 }
 0x1bc   :  { %v372_v11 = vpop.f32.mrf.mxu1 }
 0x1bd   :  { %v539_v23 = vcombine.high %v477_v16, %v477_v16  ;;  %v475_v24 = vmax.f32 %v460_v17, 0.0  ;;  %v463_v25 = vadd.f32 %v3108_v0, %v441_v18  ;;  %v439_v27 = vmul.f32 %v3102_v5, %v372_v11 }
 0x1be   :  { %v2552_v15 = vpop.f32.mrf.mxu1  ;;  %v3143_v49 = vrot.slane %v477_v16, %v3120_v29 }
 0x1bf   :  { %v444_v30 = vmul.f32 %v2552_v15, %v3102_v5  ;;  %v553_v33 = vrot.slane %v539_v23, %v3120_v29  ;;  %v512_v34 = vrot.slane %v475_v24, %v3120_v29  ;;  %v478_v35 = vmax.f32 %v463_v25, 0.0 }
 0x1c0   :  { %v385_v19 = vpop.f32.mrf.mxu1  ;;  %v461_v38 = vadd.f32 %v3108_v0, %v439_v27  ;;  %v505_v53 = vcombine.high %v475_v24, %v475_v24  ;;  %v3162_v6 = vcombine.high %v3143_v49, %v3143_v49 }
 0x1c1   :  { %v442_v31 = vmul.f32 %v3102_v5, %v385_v19  ;;  %v466_v40 = vadd.f32 %v3108_v0, %v444_v30  ;;  %v3133_v45 = vcombine.high %v553_v33, %v553_v33  ;;  %v3135_v46 = vcombine.high %v512_v34, %v512_v34 }
 0x1c2   :  { %v2553_v22 = vpop.f32.mrf.mxu1  ;;  %v3138_v47 = vrot.slane %v478_v35, %v3120_v29  ;;  %v556_v50 = vcombine.high %v478_v35, %v478_v35  ;;  %v476_v51 = vmax.f32 %v461_v38, 0.0  ;;  %v3165_v7 = vrot.slane %v505_v53, %v3120_v29 }
 0x1c3   :  { %v445_v28 = vmul.f32 %v2553_v22, %v3102_v5  ;;  %v464_v41 = vadd.f32 %v3108_v0, %v442_v31  ;;  %v481_v54 = vmax.f32 %v466_v40, 0.0  ;;  %v794_v61 = vcombine.low %v553_v33, %v3133_v45 }
 0x1c4   :  { %v388_v26 = vpop.f32.mrf.mxu1  ;;  %v760_v62 = vcombine.low %v512_v34, %v3135_v46  ;;  %v3153_v63 = vcombine.high %v3138_v47, %v3138_v47  ;;  %v3158_v2 = vrot.slane %v556_v50, %v3120_v29  ;;  %v522_v3 = vcombine.high %v476_v51, %v476_v51 }
 0x1c5   :  { %v467_v39 = vadd.f32 %v3108_v0, %v445_v28  ;;  %v443_v42 = vmul.f32 %v3102_v5, %v388_v26  ;;  %v479_v55 = vmax.f32 %v464_v41, 0.0  ;;  %v607_v8 = vcombine.high %v481_v54, %v481_v54 }
 0x1c6   :  { %v2556_v32 = vpop.f32.mrf.mxu1  ;;  %v3170_v13 = vrot.slane %v476_v51, %v3120_v29  ;;  %v3174_v16 = vrot.slane %v794_v61, %v3120_v29  ;;  %v3177_v17 = vrot.slane %v760_v62, %v3120_v29  ;;  %v795_v18 = vcombine.low %v3138_v47, %v3153_v63 }
 0x1c7   :  { %v448_v36 = vmul.f32 %v2556_v32, %v3102_v5  ;;  %v482_v52 = vmax.f32 %v467_v39, 0.0  ;;  %v465_v56 = vadd.f32 %v3108_v0, %v443_v42  ;;  %v573_v9 = vcombine.high %v479_v55, %v479_v55 }
 0x1c8   :  { %v401_v37 = vpop.f32.mrf.mxu1  ;;  %v3182_v19 = vrot.slane %v479_v55, %v3120_v29  ;;  %v3187_v22 = vrot.slane %v522_v3, %v3120_v29  ;;  %v3190_v23 = vrot.slane %v481_v54, %v3120_v29  ;;  %v3194_v25 = vrot.slane %v607_v8, %v3120_v29 }
 0x1c9   :  { %v470_v44 = vadd.f32 %v3108_v0, %v448_v36  ;;  %v446_v60 = vmul.f32 %v3102_v5, %v401_v37  ;;  %v624_v59 = vcombine.high %v482_v52, %v482_v52  ;;  %v480_v10 = vmax.f32 %v465_v56, 0.0 }
 0x1ca   :  { %v2557_v43 = vpop.f32.mrf.mxu1  ;;  %v3197_v26 = vrot.slane %v573_v9, %v3120_v29  ;;  %v572_v30 = vcombine.high %v3158_v2, %v3158_v2  ;;  %v537_v34 = vcombine.high %v3170_v13, %v3170_v13  ;;  %v3212_v36 = vcombine.high %v3182_v19, %v3182_v19 }
 0x1cb   :  { %v485_v58 = vmax.f32 %v470_v44, 0.0  ;;  %v468_v15 = vadd.f32 %v3108_v0, %v446_v60  ;;  %v638_v24 = vrot.slane %v624_v59, %v3120_v29  ;;  %v590_v27 = vcombine.high %v480_v10, %v480_v10 }
 0x1cc   :  { %v3140_v48 = vpop.f32.mrf.mxu1  ;;  %v597_v28 = vrot.slane %v480_v10, %v3120_v29  ;;  %v3215_v37 = vrot.slane %v482_v52, %v3120_v29  ;;  %v3220_v39 = vcombine.low %v572_v30, %v3182_v19  ;;  %v449_v41 = vmul.f32 %v2557_v43, %v3102_v5 }
 0x1cd   :  { %v675_v14 = vcombine.high %v485_v58, %v485_v58  ;;  %v682_v31 = vrot.slane %v485_v58, %v3120_v29  ;;  %v483_v33 = vmax.f32 %v468_v15, 0.0  ;;  %v3222_v40 = vcombine.high %v638_v24, %v638_v24 }
 0x1ce   :  { %v3146_v57 = vpop.f32.mrf.mxu1  ;;  %v3227_v42 = vcombine.high %v3197_v26, %v3197_v26  ;;  %v3231_v44 = vcombine.high %v3194_v25, %v3194_v25  ;;  %v3234_v50 = vrot.slane %v590_v27, %v3120_v29  ;;  %v3236_v51 = vcombine.high %v597_v28, %v597_v28 }
 0x1cf   :  { %v3204_v32 = vrot.slane %v675_v14, %v3120_v29  ;;  %v3238_v52 = vcombine.high %v682_v31, %v682_v31  ;;  %v641_v43 = vcombine.high %v483_v33, %v483_v33  ;;  %v3245_v54 = vrot.slane %v483_v33, %v3120_v29 }
 0x1d0   :  { %v3155_v1 = vpop.f32.mrf.mxu1  ;;  %v812_v56 = vcombine.low %v3212_v36, %v3197_v26  ;;  %v3253_v58 = vcombine.high %v3215_v37, %v3215_v37  ;;  %v447_v60 = vmul.f32 %v3102_v5, %v3140_v48  ;;  %v1060_v62 = vcombine.low %v3182_v19, %v3212_v36 }
 0x1d1   :  { %v3242_v53 = vcombine.high %v3204_v32, %v3204_v32  ;;  %v828_v3 = vcombine.low %v638_v24, %v3222_v40  ;;  %v471_v59 = vadd.f32 %v3108_v0, %v449_v41  ;;  %v1061_v8 = vcombine.low %v3197_v26, %v3227_v42 }
 0x1d2   :  { %v2561_v11 = vpop.f32.mrf.mxu1  ;;  %v3269_v10 = vcombine.high %v3234_v50, %v3234_v50  ;;  %v1169_v48 = vcombine.low %v597_v28, %v3236_v51  ;;  %v3276_v15 = vrot.slane %v641_v43, %v3120_v29  ;;  %v3280_v19 = vcombine.high %v3245_v54, %v3245_v54 }
 0x1d3   :  { %v862_v11 = vcombine.low %v682_v31, %v3238_v52  ;;  %v863_v14 = vcombine.low %v3204_v32, %v3242_v53  ;;  %v3283_v24 = vrot.slane %v812_v56, %v3120_v29  ;;  %v469_v27 = vadd.f32 %v3108_v0, %v447_v60 }
 0x1d4   :  { %v521_v28 = vcombine.high %v3165_v7, %v3165_v7  ;;  %v3291_v30 = vrot.slane %v828_v3, %v3120_v29  ;;  %v486_v33 = vmax.f32 %v471_v59, 0.0  ;;  %v538_v36 = vcombine.high %v3187_v22, %v3187_v22 }
 0x1d5   :  { %v1170_v41 = vcombine.low %v3234_v50, %v3269_v10  ;;  %v1177_v43 = vrot.slane %v1169_v48, %v3120_v29  ;;  %v870_v3 = vrot.slane %v862_v11, %v3120_v29  ;;  %v877_v4 = vrot.slane %v863_v14, %v3120_v29 }
 0x1d6   :  { %v829_v59 = vcombine.low %v3245_v54, %v3280_v19  ;;  %v484_v55 = vmax.f32 %v469_v27, 0.0  ;;  %v450_v48 = vmul.f32 %v3102_v5, %v3155_v1  ;;  %v1009_v56 = vcombine.low %v3135_v46, %v3165_v7 }
 0x1d7   :  { %v1010_v35 = vcombine.low %v521_v28, %v3170_v13  ;;  %v692_v60 = vcombine.high %v486_v33, %v486_v33  ;;  %v452_v11 = vmul.f32 %v3146_v57, %v3102_v5  ;;  %v1026_v14 = vcombine.low %v3187_v22, %v538_v36 }
 0x1d8   :  { %v1027_v9 = vcombine.low %v3143_v49, %v3162_v6  ;;  %v3321_v26 = vrot.slane %v486_v33, %v3120_v29  ;;  %v1017_v27 = vrot.slane %v1009_v56, %v3120_v29  ;;  %v777_v46 = vcombine.low %v537_v34, %v3187_v22 }
 0x1d9   :  { %v1024_v1 = vrot.slane %v1010_v35, %v3120_v29  ;;  %v1034_v38 = vrot.slane %v1026_v14, %v3120_v29  ;;  %v778_v57 = vcombine.low %v538_v36, %v3143_v49  ;;  %v809_v61 = vrot.slane %v795_v18, %v3120_v29 }
 0x1da   :  { %v1041_v31 = vrot.slane %v1027_v9, %v3120_v29  ;;  %v658_v12 = vcombine.high %v484_v55, %v484_v55  ;;  %v472_v33 = vadd.f32 %v3108_v0, %v450_v48  ;;  %v761_v56 = vcombine.low %v3165_v7, %v521_v28 }
 0x1db   :  { %v1025_v20 = vcombine.low %v1017_v27, %v1024_v1  ;;  %v785_v22 = vrot.slane %v777_v46, %v3120_v29  ;;  %v792_v34 = vrot.slane %v778_v57, %v3120_v29  ;;  %v4200_v49 = vcombine.low %v3153_v63, %v3158_v2 }
 0x1dc   :  { %v1042_v35 = vcombine.low %v1034_v38, %v1041_v31  ;;  %v3342_v36 = vrot.slane %v484_v55, %v3120_v29  ;;  %v4201_v18 = vcombine.low %v3133_v45, %v3138_v47  ;;  %v1068_v7 = vrot.slane %v1060_v62, %v3120_v29 }
 0x1dd   :  { %v1058_v9 = vrot.slane %v4200_v49, %v3120_v29  ;;  %v1075_v38 = vrot.slane %v1061_v8, %v3120_v29  ;;  %v3350_v31 = vcombine.low %v785_v22, %v792_v34  ;;  %v3353_v14 = vcombine.low %v3174_v16, %v809_v61 }
 0x1de   :  { %v1051_v48 = vrot.slane %v4201_v18, %v3120_v29  ;;  %v2634_v28 = vpack.i.bf16 %v1042_v35, %v1025_v20  ;;  %v1184_v63 = vrot.slane %v1170_v41, %v3120_v29  ;;  %v474_v55 = vadd.f32 %v3108_v0, %v452_v11  ;;  %v420_v41 = vpop.f32.mrf.mxu1 }
 0x1df   :  { %v3357_v1 = vcombine.low %v1068_v7, %v1075_v38  ;;  %v775_v45 = vrot.slane %v761_v56, %v3120_v29  ;;  %v3360_v47 = vcombine.low %v870_v3, %v877_v4  ;;  %v3363_v62 = vrot.slane %v829_v59, %v3120_v29 }
 0x1e0   :  { %v1059_v27 = vcombine.low %v1051_v48, %v1058_v9  ;;  %2635 = vrot.lane.b32.xlu1 %v2634_v28, %s2829_s5  ;;  %v2639_v16 = vpack.i.bf16 %v3353_v14, %v3350_v31  ;;  %v3368_v20 = vcombine.low %v1177_v43, %v1184_v63  ;;  %v3371_v61 = vrot.slane %v692_v60, %v3120_v29 }
 0x1e1   :  { %v707_v8 = vcombine.high %v3321_v26, %v3321_v26  ;;  %v487_v4 = vmax.f32 %v472_v33, 0.0  ;;  %v952_v59 = vrot.slane %v3321_v26, %v3120_v29  ;;  %v3381_v11 = vrot.slane %v658_v12, %v3120_v29 }
 0x1e2   :  { %v3376_v3 = vpack.i.bf16 %v3357_v1, %v1059_v27  ;;  %v3385_v43 = vcombine.high %v3342_v36, %v3342_v36  ;;  %2640 = vrot.lane.b32.xlu0 %v2639_v16, %s2830_s6  ;;  %v4202_v60 = vrot.slane %v3220_v39, %v3120_v29  ;;  %v1112_v57 = vcombine.low %v3242_v53, %v3321_v26 }
 0x1e3   :  { %v3396_v33 = vmax.f32 %v474_v55, 0.0  ;;  %v3399_v12 = vcombine.low %v3177_v17, %v775_v45  ;;  %v917_v56 = vrot.slane %v3162_v6, %v3120_v29  ;;  %v451_v22 = vmul.f32 %v3102_v5, %v420_v41 }
 0x1e4   :  { %v3392_v46 = vcombine.low %v4202_v60, %v3283_v24  ;;  %v2644_v34 = vpack.i.bf16 %v1059_v27, %v1042_v35  ;;  %2665 = vrot.lane.b32.xlu1 %v3376_v3, %s2829_s5  ;;  %v1272_v24 = vcombine.low %v3269_v10, %v3190_v23  ;;  %v3412_v49 = vcombine.high %v3371_v61, %v3371_v61 }
 0x1e5   :  { %v3415_v17 = vcombine.low %v707_v8, %v3371_v61  ;;  %v3418_v6 = vrot.slane %v487_v4, %v3120_v29  ;;  %v964_v5 = vrot.slane %v3350_v31, 1  ;;  %v846_v35 = vcombine.low %v3385_v43, %v3381_v11 }
 0x1e6   :  { %v2684_v39 = vpack.i.bf16 %v3368_v20, %v3392_v46  ;;  %2645 = vrot.lane.b32.xlu0 %v2644_v34, %s2831_s30  ;;  %v4203_v10 = vcombine.low %v3236_v51, %v3234_v50  ;;  %v1286_v18 = vrot.slane %v1272_v24, %v3120_v29  ;;  %v4204_v48 = vcombine.high %v3190_v23, %v3190_v23 }
 0x1e7   :  { %v4205_v38 = vcombine.high %v3276_v15, %v3276_v15  ;;  %v709_v63 = vcombine.high %v487_v4, %v487_v4  ;;  %v961_v55 = vrot.slane %v3399_v12, 1  ;;  %v965_v27 = vrot.slane %v917_v56, 1 }
 0x1e8   :  { %v1279_v9 = vrot.slane %v4203_v10, %v3120_v29  ;;  %v1329_v7 = vcombine.low %v4204_v48, %v3194_v25  ;;  %v473_v45 = vadd.f32 %v3108_v0, %v451_v22  ;;  %v2649_v50 = vpack.i.bf16 %v3392_v46, %v3353_v14  ;;  %2685 = vrot.lane.b32.xlu1 %v2684_v39, %s2830_s6 }
 0x1e9   :  { %v845_v28 = vcombine.low %v4205_v38, %v3342_v36  ;;  %v4206_v16 = vcombine.low %v3231_v44, %v3215_v37  ;;  %v3450_v4 = vcombine.high %v3418_v6, %v3418_v6  ;;  %v4207_v41 = vrot.slane %v3170_v13, %v3120_v29 }
 0x1ea   :  { %v3442_v51 = vcombine.low %v1279_v9, %v1286_v18  ;;  %v966_v60 = vsel %vm960_vm4, %v964_v5, %v965_v27  ;;  %v924_v56 = vrot.slane %v3158_v2, %v3120_v29  ;;  %v860_v22 = vrot.slane %v846_v35, %v3120_v29  ;;  %2650 = vrot.lane.b32.xlu0 %v2649_v50, %s2832_s19 }
 0x1eb   :  { %v1344_v8 = vrot.slane %v4206_v16, %v3120_v29  ;;  %v962_v0 = vrot.slane %v4207_v41, 1  ;;  %v880_v34 = vcombine.low %v3412_v49, %v3418_v6  ;;  %v1337_v24 = vrot.slane %v1329_v7, %v3120_v29 }
 0x1ec   :  { %v2689_v39 = vpack.i.bf16 %v3442_v51, %v3357_v1  ;;  %v967_v5 = vrot.slane %v3353_v14, 1  ;;  %v931_v2 = vrot.slane %v3227_v42, %v3120_v29  ;;  %v1241_v35 = vrot.slane %v3368_v20, 1 }
 0x1ed   :  { %v963_v13 = vsel %vm960_vm4, %v961_v55, %v962_v0  ;;  %v853_v10 = vrot.slane %v845_v28, %v3120_v29  ;;  %v488_v9 = vmax.f32 %v473_v45, 0.0  ;;  %v1345_v48 = vcombine.low %v1337_v24, %v1344_v8 }
 0x1ee   :  { %v2654_v18 = vpack.i.bf16 %v966_v60, %v963_v13  ;;  %2690 = vrot.lane.b32.xlu1 %v2689_v39, %s2831_s30  ;;  %v3474_v1 = vcombine.high %v3381_v11, %v3381_v11  ;;  %v968_v7 = vrot.slane %v924_v56, 1  ;;  %v970_v38 = vrot.slane %v3392_v46, 1 }
 0x1ef   :  { %v4208_v55 = vrot.slane %v3190_v23, %v3120_v29  ;;  %v3480_v27 = vcombine.low %v853_v10, %v860_v22  ;;  %v3483_v28 = vrot.slane %v709_v63, %v3120_v29  ;;  %v894_v45 = vrot.slane %v880_v34, %v3120_v29 }
 0x1f0   :  { %2655 = vrot.lane.b32.xlu0 %v2654_v18, %s2833_s18  ;;  %v2694_v50 = vpack.i.bf16 %v1345_v48, %v3368_v20  ;;  %v969_v16 = vsel %vm960_vm4, %v967_v5, %v968_v7  ;;  %v971_v8 = vrot.slane %v931_v2, 1  ;;  %v1393_v23 = vrot.slane %v3253_v58, %v3120_v29 }
 0x1f1   :  { %v1242_v42 = vrot.slane %v4208_v55, 1  ;;  %v1129_v0 = vcombine.low %v3418_v6, %v3450_v4  ;;  %v3495_v63 = vrot.slane %v488_v9, %v3120_v29  ;;  %v2659_v56 = vpack.i.bf16 %v969_v16, %v966_v60 }
 0x1f2   :  { %2695 = vrot.lane.b32.xlu1 %v2694_v50, %s2832_s19  ;;  %v3500_v20 = vcombine.low %v3291_v30, %v3363_v62  ;;  %v1401_v22 = vrot.slane %v1345_v48, 1  ;;  %v972_v34 = vsel %vm960_vm4, %v970_v38, %v971_v8  ;;  %v938_v39 = vrot.slane %v3276_v15, %v3120_v29 }
 0x1f3   :  { %v1243_v41 = vsel %vm960_vm4, %v1241_v35, %v1242_v42  ;;  %v945_v24 = vrot.slane %v3474_v1, %v3120_v29  ;;  %v887_v6 = vrot.slane %v3415_v17, %v3120_v29  ;;  %v3512_v60 = vrot.slane %v952_v59, 1 }
 0x1f4   :  { %v726_v13 = vcombine.high %v488_v9, %v488_v9  ;;  %2660 = vrot.lane.b32.xlu0 %v2659_v56, %s2834_s1  ;;  %v2704_v30 = vpack.i.bf16 %v1243_v41, %v972_v34  ;;  %v1128_v62 = vcombine.low %v3371_v61, %v3412_v49  ;;  %v3519_v5 = vcombine.high %v3483_v28, %v3483_v28 }
 0x1f5   :  { %v1402_v2 = vrot.slane %v1393_v23, 1  ;;  %v976_v17 = vrot.slane %v3480_v27, 1  ;;  %v3522_v35 = vcombine.low %v887_v6, %v894_v45  ;;  %v3526_v59 = vcombine.high %v3495_v63, %v3495_v63 }
 0x1f6   :  { %2705 = vrot.lane.b32.xlu1 %v2704_v30, %s2834_s1  ;;  %v973_v10 = vrot.slane %v3500_v20, 1  ;;  %v974_v61 = vrot.slane %v938_v39, 1  ;;  %v977_v49 = vrot.slane %v945_v24, 1  ;;  %v1143_v18 = vrot.slane %v1129_v0, %v3120_v29  ;;  %v1568_v0 = vld [vmem:[%s4181_s7 + $0x38] sm:$0xff] }
 0x1f7   :  { %v1403_v9 = vsel %vm960_vm4, %v1401_v22, %v1402_v2  ;;  %v3533_v48 = vrot.slane %v726_v13, %v3120_v29  ;;  %v1431_v38 = vcombine.low %v3194_v25, %v3231_v44  ;;  %v959_v55 = vrot.slane %v3450_v4, %v3120_v29 }
 0x1f8   :  { %2670 = vrot.lane.b32.xlu0 %v3376_v3, %s2835_s20  ;;  %v2709_v7 = vpack.i.bf16 %v1403_v9, %v1243_v41  ;;  %v3542_v42 = vsel %vm960_vm4, %v976_v17, %v977_v49  ;;  %v4209_v45 = vcombine.low %v3238_v52, %v3204_v32  ;;  %v1126_v3 = vrot.slane %v1112_v57, %v3120_v29 }
 0x1f9   :  { %v1136_v8 = vrot.slane %v1128_v62, %v3120_v29  ;;  %v743_v25 = vcombine.high %v3396_v33, %v3396_v33  ;;  %v3557_v44 = vrot.slane %v3396_v33, %v3120_v29  ;;  %v2674_v4 = vpack.i.bf16 %v972_v34, %v969_v16 }
 0x1fa   :  { %v1119_v50 = vrot.slane %v4209_v45, %v3120_v29  ;;  %2710 = vrot.lane.b32.xlu1 %v2709_v7, %s2836_s26  ;;  %v4210_v32 = vcombine.low %v3215_v37, %v3253_v58  ;;  %v1186_v53 = vcombine.low %v3483_v28, %v3519_v5  ;;  %v1187_v26 = vcombine.low %v3495_v63, %v3526_v59  ;;  %v1569_v58 = vld [vmem:[%s4181_s7 + $0x40] sm:$0xff]  ;;  %v1567_v28 = vld [vmem:[%s4181_s7 + $0x30] sm:$0xff] }
 0x1fb   :  { %v975_v57 = vsel %vm960_vm4, %v973_v10, %v974_v61  ;;  %v3569_v41 = vcombine.low %v1136_v8, %v1143_v18  ;;  %v1439_v16 = vrot.slane %v1431_v38, %v3120_v29  ;;  %v982_v23 = vrot.slane %v3522_v35, 1  ;;  %v1564_v8 = vld [vmem:[%s4181_s7 + $0x18] sm:$0xff] }
 0x1fc   :  { %v1446_v52 = vrot.slane %v4210_v32, %v3120_v29  ;;  %2675 = vrot.lane.b32.xlu0 %v2674_v4, %s2833_s18  ;;  %v2734_v33 = vpack.i.bf16 %v3542_v42, %v975_v57  ;;  %v983_v37 = vrot.slane %v959_v55, 1  ;;  %v1094_v56 = vcombine.low %v3342_v36, %v3385_v43 }
 0x1fd   :  { %v742_v22 = vcombine.high %v3533_v48, %v3533_v48  ;;  %v1288_v34 = vcombine.low %v3519_v5, %v3495_v63  ;;  %v3590_v39 = vcombine.low %v1119_v50, %v1126_v3  ;;  %v979_v6 = vrot.slane %v3360_v47, 1  ;;  %v1563_v3 = vld [vmem:[%s4181_s7 + $0x10] sm:$0xff] }
 0x1fe   :  { %2735 = vrot.lane.b32.xlu1 %v2734_v33, %s2833_s18  ;;  %v1447_v24 = vcombine.low %v1439_v16, %v1446_v52  ;;  %v1095_v13 = vcombine.low %v3381_v11, %v3474_v1  ;;  %v1078_v36 = vcombine.low %v3280_v19, %v3276_v15  ;;  %v1578_v43 = vpack.c.bf16 %v1569_v58, %v1569_v58  ;;  %v1565_v1 = vld [vmem:[%s4181_s7 + $0x20] sm:$0xff]  ;;  %v1566_v15 = vld [vmem:[%s4181_s7 + $0x28] sm:$0xff] }
 0x1ff   :  { %v3598_v30 = vpack.i.bf16 %v3569_v41, %v3590_v39  ;;  %v1577_v62 = vpack.c.bf16 %v1568_v0, %v1567_v28  ;;  %v3604_v63 = vsel %vm960_vm4, %v982_v23, %v983_v37  ;;  %v1194_v5 = vrot.slane %v1186_v53, %v3120_v29  ;;  %v1562_v23 = vld [vmem:[%s4181_s7 + $0x8] sm:$0xff] }
 0x200   :  { %2680 = vrot.lane.b32.xlu0 %v2674_v4, %s2836_s26  ;;  %v1201_v2 = vrot.slane %v1187_v26, %v3120_v29  ;;  %v1289_v11 = vcombine.low %v3526_v59, %v3533_v48  ;;  %v3617_v19 = vrot.slane %v743_v25, %v3120_v29  ;;  %v3621_v17 = vcombine.high %v3557_v44, %v3557_v44 }
 0x201   :  { %v2699_v10 = vpack.i.bf16 %v1447_v24, %v3442_v51  ;;  %2615 = vmatprep.subr.msk.bf16.mxu1 %vm331_vm2, %v1578_v43  ;;  %v1592_v59 = vsel %vm331_vm2, %v1578_v43, 0  ;;  %v3630_v9 = vsel %vm960_vm4, %v979_v6, %v3512_v60  ;;  %v1102_v61 = vrot.slane %v1094_v56, %v3120_v29 }
 0x202   :  { %2745 = vrot.lane.b32.xlu1 %v3598_v30, %s2829_s5  ;;  %v1109_v49 = vrot.slane %v1095_v13, %v3120_v29  ;;  %2563 = vmatpush3.bf16.msra.mxu1 %v1592_v59  ;;  %v3636_v18 = vpack.i.bf16 %v3604_v63, %v3630_v9  ;;  %v1092_v51 = vrot.slane %v1078_v36, %v3120_v29 }
 0x203   :  { %v1296_v7 = vrot.slane %v1288_v34, %v3120_v29  ;;  %2564 = vmatprep.subr.bf16.mxu1 %v1577_v62  ;;  %v1576_v38 = vpack.c.bf16 %v1566_v15, %v1565_v1  ;;  %v1202_v55 = vcombine.low %v1194_v5, %v1201_v2  ;;  %v1303_v60 = vrot.slane %v1289_v11, %v3120_v29 }
 0x204   :  { %2700 = vrot.lane.b32.xlu0 %v2699_v10, %s2835_s20  ;;  %v1346_v45 = vcombine.low %v742_v22, %v3557_v44  ;;  %v1347_v50 = vcombine.low %v3621_v17, %v3617_v19  ;;  %v4211_v25 = vcombine.low %v3222_v40, %v3245_v54  ;;  %v2714_v32 = vpack.i.bf16 %v3360_v47, %v3480_v27  ;;  %v1561_v54 = vld [vmem:[%s4181_s7] sm:$0xff] }
 0x205   :  { %v1110_v52 = vcombine.low %v1102_v61, %v1109_v49  ;;  %v1575_v26 = vpack.c.bf16 %v1564_v8, %v1563_v3  ;;  %v2764_v57 = vpack.i.bf16 %v1202_v55, %v3522_v35  ;;  %v1304_v33 = vcombine.low %v1296_v7, %v1303_v60 }
 0x206   :  { %v1085_v4 = vrot.slane %v4211_v25, %v3120_v29  ;;  %2750 = vrot.lane.b32.xlu1 %v3636_v18, %s2833_s18  ;;  %2565 = vmatpush3.bf16.msra.mxu1 %v1577_v62  ;;  %v1354_v16 = vrot.slane %v1346_v45, %v3120_v29  ;;  %v1361_v40 = vrot.slane %v1347_v50, %v3120_v29  ;;  %v1244_v34 = vrot.slane %v1202_v55, 1 }
 0x207   :  { %2566 = vmatprep.subr.bf16.mxu1 %v1576_v38  ;;  %v1240_v58 = vrot.slane %v3533_v48, %v3120_v29  ;;  %v1574_v28 = vpack.c.bf16 %v1562_v23, %v1561_v54  ;;  %v759_v0 = vcombine.high %v3617_v19, %v3617_v19  ;;  %v2769_v56 = vpack.i.bf16 %v1304_v33, %v3569_v41 }
 0x208   :  { %v1093_v53 = vcombine.low %v1085_v4, %v1092_v51  ;;  %2715 = vrot.lane.b32.xlu0 %v2714_v32, %s2830_s6  ;;  %v1362_v22 = vcombine.low %v1354_v16, %v1361_v40  ;;  %v2724_v24 = vpack.i.bf16 %v3590_v39, %v1110_v52  ;;  %v1448_v48 = vcombine.low %v3557_v44, %v3621_v17 }
 0x209   :  { %v1245_v6 = vrot.slane %v1240_v58, 1  ;;  %v1400_v13 = vrot.slane %v759_v0, %v3120_v29  ;;  %v1449_v43 = vcombine.low %v3617_v19, %v759_v0  ;;  %v2729_v39 = vpack.i.bf16 %v3522_v35, %v3360_v47 }
 0x20a   :  { %v2719_v37 = vpack.i.bf16 %v1110_v52, %v1093_v53  ;;  %2765 = vrot.lane.b32.xlu1 %v2764_v57, %s2830_s6  ;;  %2567 = vmatpush3.bf16.msra.mxu1 %v1576_v38  ;;  %v2774_v36 = vpack.i.bf16 %v1362_v22, %v1202_v55  ;;  %v1404_v41 = vrot.slane %v1362_v22, 1  ;;  %v4212_v2 = vmov 0  }
 0x20b   :  { %2568 = vmatprep.subr.bf16.mxu1 %v1575_v26  ;;  %v1246_v62 = vsel %vm960_vm4, %v1244_v34, %v1245_v6  ;;  %v1405_v5 = vrot.slane %v1400_v13, 1  ;;  %v1456_v11 = vrot.slane %v1448_v48, %v3120_v29  ;;  %v1463_v1 = vrot.slane %v1449_v43, %v3120_v29 }
 0x20c   :  { %2720 = vrot.lane.b32.xlu0 %v2719_v37, %s2829_s5  ;;  %v2779_v44 = vpack.i.bf16 %v1246_v62, %v3604_v63  ;;  %v2739_v19 = vpack.i.bf16 %v3630_v9, %v3542_v42 }
 0x20d   :  { %v1406_v15 = vsel %vm960_vm4, %v1404_v41, %v1405_v5  ;;  %v1464_v10 = vcombine.low %v1456_v11, %v1463_v1 }
 0x20e   :  { %2770 = vrot.lane.b32.xlu1 %v2769_v56, %s2831_s30  ;;  %2569 = vmatpush3.bf16.msra.mxu1 %v1575_v26  ;;  %v2784_v17 = vpack.i.bf16 %v1406_v15, %v1246_v62 }
 0x20f   :  { %2570 = vmatprep.subr.bf16.mxu1 %v1574_v28  ;;  %v2789_v63 = vpack.i.bf16 %v1464_v10, %v1304_v33 }
 0x210   :  { %2725 = vrot.lane.b32.xlu0 %v2724_v24, %s2831_s30 }
 0x212   :  { %2775 = vrot.lane.b32.xlu1 %v2774_v36, %s2832_s19  ;;  %2571 = vmatpush3.bf16.msra.mxu1 %v1574_v28 }
 0x213   :  { %2275 = vmatprep.subr.bf16.mxu1 %v4212_v2 }
 0x214   :  { %2730 = vrot.lane.b32.xlu0 %v2729_v39, %s2832_s19 }
 0x216   :  { %2780 = vrot.lane.b32.xlu1 %v2779_v44, %s2834_s1 }
 0x218   :  { %2740 = vrot.lane.b32.xlu0 %v2739_v19, %s2834_s1 }
 0x21a   :  { %2785 = vrot.lane.b32.xlu1 %v2784_v17, %s2836_s26 }
 0x21c   :  { %2755 = vrot.lane.b32.xlu0 %v3636_v18, %s2836_s26 }
 0x21e   :  { %2790 = vrot.lane.b32.xlu1 %v2789_v63, %s2835_s20 }
 0x220   :  { %2760 = vrot.lane.b32.xlu0 %v3598_v30, %s2835_s20 }
 0x252   :  { %v2636_v59 = vpop.permute.xlu1 %2635 }
 0x253   :  { %v2638_v60 = vunpack.i.h.bf16 %v2636_v59  ;;  %v2637_v45 = vunpack.i.l.bf16 %v2636_v59 }
 0x254   :  { %v2641_v61 = vpop.permute.xlu0 %2640 }
 0x255   :  { %v2643_v32 = vunpack.i.h.bf16 %v2641_v61  ;;  %v2642_v52 = vunpack.i.l.bf16 %v2641_v61 }
 0x256   :  { %v2666_v42 = vpop.permute.xlu1 %2665 }
 0x257   :  { %v2668_v58 = vunpack.i.h.bf16 %v2666_v42  ;;  %v2667_v28 = vunpack.i.l.bf16 %v2666_v42 }
 0x258   :  { %v2646_v9 = vpop.permute.xlu0 %2645 }
 0x259   :  { %v2648_v23 = vunpack.i.h.bf16 %v2646_v9  ;;  %v2647_v37 = vunpack.i.l.bf16 %v2646_v9 }
 0x25a   :  { %v3703_v49 = vpop.permute.xlu1 %2685 }
 0x25b   :  { %v2688_v22 = vunpack.i.h.bf16 %v3703_v49  ;;  %v2687_v34 = vunpack.i.l.bf16 %v3703_v49 }
 0x25c   :  { %v2651_v51 = vpop.permute.xlu0 %2650 }
 0x25d   :  { %v2653_v0 = vunpack.i.h.bf16 %v2651_v51  ;;  %v2652_v56 = vunpack.i.l.bf16 %v2651_v51 }
 0x260   :  { %v3705_v7 = vpop.permute.xlu1 %2690 }
 0x261   :  { %v2693_v43 = vunpack.i.h.bf16 %v3705_v7  ;;  %v2692_v41 = vunpack.i.l.bf16 %v3705_v7 }
 0x262   :  { %v2656_v38 = vpop.permute.xlu0 %2655 }
 0x263   :  { %v2658_v55 = vunpack.i.h.bf16 %v2656_v38  ;;  %v2657_v18 = vunpack.i.l.bf16 %v2656_v38 }
 0x264   :  { %v3707_v50 = vpop.permute.xlu1 %2695 }
 0x265   :  { %v1491_v30 = vsel %vm1489_vm5, %v3350_v31, %v2658_v55  ;;  %v1490_v3 = vsel %vm1489_vm5, %v3399_v12, %v2657_v18  ;;  %v2698_v62 = vunpack.i.h.bf16 %v3707_v50  ;;  %v2697_v39 = vunpack.i.l.bf16 %v3707_v50 }
 0x266   :  { %v1500_v8 = vsel %vm1498_vm6, %v1491_v30, %v2638_v60  ;;  %v1499_v25 = vsel %vm1498_vm6, %v1490_v3, %v2637_v45  ;;  %v2661_v4 = vpop.permute.xlu0 %2660 }
 0x267   :  { %v2663_v53 = vunpack.i.h.bf16 %v2661_v4  ;;  %v2662_v26 = vunpack.i.l.bf16 %v2661_v4  ;;  %v1508_v33 = vsel %vm1507_vm7, %v1499_v25, %v2642_v52  ;;  %v1509_v16 = vsel %vm1507_vm7, %v1500_v8, %v2643_v32 }
 0x268   :  { %v2706_v57 = vpop.permute.xlu1 %2705 }
 0x269   :  { %v1517_v12 = vsel %vm1516_vm8, %v1508_v33, %v2662_v26  ;;  %v1518_v40 = vsel %vm1516_vm8, %v1509_v16, %v2663_v53  ;;  %v2708_v44 = vunpack.i.h.bf16 %v2706_v57  ;;  %v2707_v11 = vunpack.i.l.bf16 %v2706_v57 }
 0x26a   :  { %v2671_v31 = vpop.permute.xlu0 %2670  ;;  %v1526_v6 = vsel %vm1525_vm9, %v1517_v12, %v2647_v37  ;;  %v1527_v13 = vsel %vm1525_vm9, %v1518_v40, %v2648_v23 }
 0x26b   :  { %v1535_v10 = vsel %vm1534_vm10, %v1526_v6, %v2652_v56  ;;  %v1536_v63 = vsel %vm1534_vm10, %v1527_v13, %v2653_v0  ;;  %v2673_v50 = vunpack.i.h.bf16 %v2671_v31  ;;  %v2672_v30 = vunpack.i.l.bf16 %v2671_v31 }
 0x26c   :  { %v2711_v54 = vpop.permute.xlu1 %2710 }
 0x26d   :  { %v2713_v51 = vunpack.i.h.bf16 %v2711_v54 }
 0x26e   :  { %v2676_v24 = vpop.permute.xlu0 %2675 }
 0x26f   :  { %v2678_v48 = vunpack.i.h.bf16 %v2676_v24  ;;  %v2677_v36 = vunpack.i.l.bf16 %v2676_v24 }
 0x270   :  { %v2736_v5 = vpop.permute.xlu1 %2735 }
 0x271   :  { %v1493_v1 = vsel %vm1489_vm5, %v3392_v46, %v2678_v48  ;;  %v1492_v15 = vsel %vm1489_vm5, %v3353_v14, %v2677_v36  ;;  %v2712_v46 = vunpack.i.l.bf16 %v2711_v54  ;;  %v2738_v56 = vunpack.i.h.bf16 %v2736_v5 }
 0x272   :  { %v1502_v19 = vsel %vm1498_vm6, %v1493_v1, %v2668_v58  ;;  %v1501_v17 = vsel %vm1498_vm6, %v1492_v15, %v2667_v28  ;;  %v2681_v59 = vpop.permute.xlu0 %2680 }
 0x273   :  { %v1510_v61 = vsel %vm1507_vm7, %v1501_v17, %v2687_v34  ;;  %v1511_v42 = vsel %vm1507_vm7, %v1502_v19, %v2688_v22  ;;  %v2683_v9 = vunpack.i.h.bf16 %v2681_v59  ;;  %v2682_v49 = vunpack.i.l.bf16 %v2681_v59 }
 0x274   :  { %v1519_v7 = vsel %vm1516_vm8, %v1510_v61, %v2707_v11  ;;  %v1520_v14 = vsel %vm1516_vm8, %v1511_v42, %v2708_v44  ;;  %v2746_v38 = vpop.permute.xlu1 %2745  ;;  %v2737_v22 = vunpack.i.l.bf16 %v2736_v5 }
 0x275   :  { %v1528_v55 = vsel %vm1525_vm9, %v1519_v7, %v2692_v41  ;;  %v1529_v18 = vsel %vm1525_vm9, %v1520_v14, %v2693_v43  ;;  %v1545_v60 = vsel %vm1543_vm11, %v1536_v63, %v2683_v9  ;;  %v1544_v45 = vsel %vm1543_vm11, %v1535_v10, %v2682_v49 }
 0x276   :  { %v1537_v3 = vsel %vm1534_vm10, %v1528_v55, %v2697_v39  ;;  %v1538_v8 = vsel %vm1534_vm10, %v1529_v18, %v2698_v62  ;;  %v2701_v25 = vpop.permute.xlu0 %2700  ;;  %v1553_v26 = vsel %vm1552_vm12, %v1544_v45, %v2672_v30  ;;  %v1554_v57 = vsel %vm1552_vm12, %v1545_v60, %v2673_v50 }
 0x277   :  { %v1546_v4 = vsel %vm1543_vm11, %v1537_v3, %v2712_v46  ;;  %v1547_v32 = vsel %vm1543_vm11, %v1538_v8, %v2713_v51  ;;  %v2703_v52 = vunpack.i.h.bf16 %v2701_v25  ;;  %v2702_v53 = vunpack.i.l.bf16 %v2701_v25 }
 0x278   :  { %v2751_v33 = vpop.permute.xlu1 %2750  ;;  %v1570_v12 = vpack.c.bf16 %v1554_v57, %v1553_v26  ;;  %v1495_v62 = vsel %vm1489_vm5, %v3480_v27, %v2738_v56  ;;  %v1494_v39 = vsel %vm1489_vm5, %v3500_v20, %v2737_v22  ;;  %v2748_v44 = vunpack.i.h.bf16 %v2746_v38 }
 0x279   :  { %v1555_v16 = vsel %vm1552_vm12, %v1546_v4, %v2702_v53  ;;  %v1556_v31 = vsel %vm1552_vm12, %v1547_v32, %v2703_v52  ;;  %v2753_v28 = vunpack.i.h.bf16 %v2751_v33  ;;  %v2752_v0 = vunpack.i.l.bf16 %v2751_v33 }
 0x27a   :  { %v1571_v40 = vpack.c.bf16 %v1556_v31, %v1555_v16  ;;  %v2716_v54 = vpop.permute.xlu0 %2715  ;;  %2572 = vmatprep.mubr.msk.bf16.mxu1 %vm306_vm3, %v1570_v12  ;;  %v2747_v5 = vunpack.i.l.bf16 %v2746_v38 }
 0x27b   :  { %v1497_v48 = vsel %vm1489_vm5, %v3522_v35, %v2753_v28  ;;  %v1496_v36 = vsel %vm1489_vm5, %v3360_v47, %v2752_v0  ;;  %v2718_v19 = vunpack.i.h.bf16 %v2716_v54  ;;  %v2717_v35 = vunpack.i.l.bf16 %v2716_v54 }
 0x27c   :  { %2573 = vmatmul.mubr.msk.bf16.vlgmr.msra.gmra.mxu1 %vm306_vm3, %v1571_v40  ;;  %v2766_v23 = vpop.permute.xlu1 %2765  ;;  %v1505_v17 = vsel %vm1498_vm6, %v1496_v36, %v2747_v5  ;;  %v1506_v47 = vsel %vm1498_vm6, %v1497_v48, %v2748_v44  ;;  %v2447_v44 = vld [vmem:[%s4182_s8] ss:$0 sm:$0xff]  ;;  %s2840_s8 = smov 112  }
 0x27d   :  { %v2768_v43 = vunpack.i.h.bf16 %v2766_v23  ;;  %v2767_v41 = vunpack.i.l.bf16 %v2766_v23 }
 0x27e   :  { %v2721_v37 = vpop.permute.xlu0 %2720 }
 0x27f   :  { %v2723_v24 = vunpack.i.h.bf16 %v2721_v37  ;;  %v2722_v6 = vunpack.i.l.bf16 %v2721_v37  ;;  %v1515_v63 = vsel %vm1507_vm7, %v1506_v47, %v2768_v43  ;;  %v1514_v27 = vsel %vm1507_vm7, %v1505_v17, %v2767_v41 }
 0x280   :  { %v2771_v58 = vpop.permute.xlu1 %2770 }
 0x281   :  { %v1503_v1 = vsel %vm1498_vm6, %v1494_v39, %v2722_v6  ;;  %v1504_v15 = vsel %vm1498_vm6, %v1495_v62, %v2723_v24  ;;  %v2773_v61 = vunpack.i.h.bf16 %v2771_v58  ;;  %v2772_v42 = vunpack.i.l.bf16 %v2771_v58 }
 0x282   :  { %v2726_v34 = vpop.permute.xlu0 %2725  ;;  %v1512_v9 = vsel %vm1507_vm7, %v1503_v1, %v2717_v35  ;;  %v1513_v49 = vsel %vm1507_vm7, %v1504_v15, %v2718_v19 }
 0x283   :  { %v2728_v55 = vunpack.i.h.bf16 %v2726_v34  ;;  %v2727_v18 = vunpack.i.l.bf16 %v2726_v34 }
 0x284   :  { %v2776_v13 = vpop.permute.xlu1 %2775 }
 0x285   :  { %v2778_v30 = vunpack.i.h.bf16 %v2776_v13  ;;  %v2777_v3 = vunpack.i.l.bf16 %v2776_v13 }
 0x286   :  { %v2731_v11 = vpop.permute.xlu0 %2730 }
 0x287   :  { %v2733_v57 = vunpack.i.h.bf16 %v2731_v11  ;;  %v2732_v33 = vunpack.i.l.bf16 %v2731_v11  ;;  %v3797_v11 = vld [vmem:[%s4183_s9] ss:$0 sm:$0xff] }
 0x288   :  { %v2781_v10 = vpop.permute.xlu1 %2780 }
 0x289   :  { %v2783_v59 = vunpack.i.h.bf16 %v2781_v10  ;;  %v2782_v20 = vunpack.i.l.bf16 %v2781_v10 }
 0x28a   :  { %v2741_v51 = vpop.permute.xlu0 %2740 }
 0x28b   :  { %v2743_v46 = vunpack.i.h.bf16 %v2741_v51  ;;  %v2742_v7 = vunpack.i.l.bf16 %v2741_v51  ;;  %v1524_v14 = vsel %vm1516_vm8, %v1515_v63, %v2783_v59  ;;  %v1523_v38 = vsel %vm1516_vm8, %v1514_v27, %v2782_v20 }
 0x28c   :  { %v1533_v60 = vsel %vm1525_vm9, %v1524_v14, %v2773_v61  ;;  %v1532_v45 = vsel %vm1525_vm9, %v1523_v38, %v2772_v42  ;;  %v2786_v50 = vpop.permute.xlu1 %2785 }
 0x28d   :  { %v1522_v8 = vsel %vm1516_vm8, %v1513_v49, %v2743_v46  ;;  %v1521_v25 = vsel %vm1516_vm8, %v1512_v9, %v2742_v7  ;;  %v2788_v53 = vunpack.i.h.bf16 %v2786_v50  ;;  %v2787_v26 = vunpack.i.l.bf16 %v2786_v50 }
 0x28e   :  { %v1531_v4 = vsel %vm1525_vm9, %v1522_v8, %v2728_v55  ;;  %v1530_v32 = vsel %vm1525_vm9, %v1521_v25, %v2727_v18  ;;  %v2756_v52 = vpop.permute.xlu0 %2755  ;;  %v1541_v16 = vsel %vm1534_vm10, %v1532_v45, %v2777_v3  ;;  %v1542_v31 = vsel %vm1534_vm10, %v1533_v60, %v2778_v30  ;;  %v1925_v25 = vld [vmem:[%s4184_s10 + $0x40] sm:$0xff] }
 0x28f   :  { %v2758_v12 = vunpack.i.h.bf16 %v2756_v52  ;;  %v2757_v40 = vunpack.i.l.bf16 %v2756_v52  ;;  %v1539_v23 = vsel %vm1534_vm10, %v1530_v32, %v2732_v33  ;;  %v1540_v37 = vsel %vm1534_vm10, %v1531_v4, %v2733_v57 }
 0x290   :  { %v2791_v54 = vpop.permute.xlu1 %2790  ;;  %v1551_v0 = vsel %vm1543_vm11, %v1542_v31, %v2788_v53  ;;  %v1550_v56 = vsel %vm1543_vm11, %v1541_v16, %v2787_v26  ;;  %v1986_v32 = vpack.c.bf16 %v1925_v25, %v1925_v25 }
 0x291   :  { %v2793_v58 = vunpack.i.h.bf16 %v2791_v54  ;;  %v2792_v28 = vunpack.i.l.bf16 %v2791_v54  ;;  %v1549_v48 = vsel %vm1543_vm11, %v1540_v37, %v2758_v12  ;;  %v1548_v36 = vsel %vm1543_vm11, %v1539_v23, %v2757_v40  ;;  %v1923_v54 = vld [vmem:[%s4184_s10 + $0x30] sm:$0xff]  ;;  %v1924_v23 = vld [vmem:[%s4184_s10 + $0x38] sm:$0xff] }
 0x292   :  { %v2761_v22 = vpop.permute.xlu0 %2760  ;;  %2616 = vmatprep.subr.msk.bf16.mxu0 %vm331_vm2, %v1986_v32  ;;  %v1994_v53 = vsel %vm331_vm2, %v1986_v32, 0  ;;  %v1985_v37 = vpack.c.bf16 %v1924_v23, %v1923_v54  ;;  %vm2392_vm2 = vcmask 25600  }
 0x293   :  { %v2763_v34 = vunpack.i.h.bf16 %v2761_v22  ;;  %v2762_v24 = vunpack.i.l.bf16 %v2761_v22  ;;  %v1559_v6 = vsel %vm1552_vm12, %v1550_v56, %v2792_v28  ;;  %v1560_v13 = vsel %vm1552_vm12, %v1551_v0, %v2793_v58  ;;  %2581 = vmatpush3.bf16.msra.mxu0 %v1994_v53  ;;  %v1921_v22 = vld [vmem:[%s4184_s10 + $0x20] sm:$0xff] }
 0x294   :  { %v1573_v62 = vpack.c.bf16 %v1560_v13, %v1559_v6  ;;  %2582 = vmatprep.subr.bf16.mxu0 %v1985_v37 }
 0x295   :  { %v1557_v43 = vsel %vm1552_vm12, %v1548_v36, %v2762_v24  ;;  %v1558_v41 = vsel %vm1552_vm12, %v1549_v48, %v2763_v34  ;;  %v1922_v34 = vld [vmem:[%s4184_s10 + $0x28] sm:$0xff] }
 0x296   :  { %v1572_v39 = vpack.c.bf16 %v1558_v41, %v1557_v43  ;;  %v1984_v13 = vpack.c.bf16 %v1922_v34, %v1921_v22 }
 0x297   :  { %2583 = vmatpush3.bf16.msra.mxu0 %v1985_v37 }
 0x298   :  { %2576 = vmatprep.mubr.msk.bf16.mxu1 %vm306_vm3, %v1572_v39  ;;  %2584 = vmatprep.subr.bf16.mxu0 %v1984_v13  ;;  %v1920_v39 = vld [vmem:[%s4184_s10 + $0x18] sm:$0xff] }
 0x299   :  { %2577 = vmatmul.mubr.msk.bf16.gmra.mxu1 %vm306_vm3, %v1573_v62  ;;  %v1919_v62 = vld [vmem:[%s4184_s10 + $0x10] sm:$0xff] }
 0x29b   :  { %2585 = vmatpush3.bf16.msra.mxu0 %v1984_v13 }
 0x33c   :  { %v2574_v5 = vpop.f32.mrf.mxu1 }
 0x33d   :  { %v1668_v1 = vmul.f32 %v2574_v5, %v2447_v44  ;;  %v1983_v5 = vpack.c.bf16 %v1920_v39, %v1919_v62 }
 0x33e   :  { %v1628_v15 = vpop.f32.mrf.mxu1 }
 0x33f   :  { %v1683_v19 = vadd.f32 %v3797_v11, %v1668_v1  ;;  %v1666_v17 = vmul.f32 %v2447_v44, %v1628_v15  ;;  %2586 = vmatprep.subr.bf16.mxu0 %v1983_v5 }
 0x340   :  { %v2575_v47 = vpop.f32.mrf.mxu1  ;;  %2587 = vmatpush3.bf16.msra.mxu0 %v1983_v5 }
 0x341   :  { %v1691_v35 = vmax.f32 %v1683_v19, 0.0  ;;  %v1681_v10 = vadd.f32 %v3797_v11, %v1666_v17  ;;  %v1669_v63 = vmul.f32 %v2575_v47, %v2447_v44 }
 0x342   :  { %v1631_v59 = vpop.f32.mrf.mxu1 }
 0x343   :  { %1777 = vrot.lane.b32.xlu0 %v1691_v35, %s2832_s19  ;;  %1737 = vrot.lane.b32.xlu1 %v1691_v35, %s2830_s6  ;;  %v1747_v27 = vrot.slane %v1691_v35, 1  ;;  %v3805_v20 = vmax.f32 %v1681_v10, 0.0  ;;  %v1684_v61 = vadd.f32 %v3797_v11, %v1669_v63  ;;  %v1667_v42 = vmul.f32 %v2447_v44, %v1631_v59 }
 0x344   :  { %v1761_v9 = vrot.slane %v1691_v35, 2 }
 0x345   :  { %v3810_v49 = vmax.f32 %v1684_v61, 0.0  ;;  %v1682_v51 = vadd.f32 %v3797_v11, %v1667_v42  ;;  %v1701_v46 = vrot.slane %v3805_v20, 1  ;;  %v1717_v14 = vrot.slane %v3805_v20, 2 }
 0x347   :  { %1791 = vrot.lane.b32.xlu0 %v1747_v27, %s2836_s26  ;;  %1751 = vrot.lane.b32.xlu1 %v1747_v27, %s2834_s1  ;;  %v3817_v7 = vmax.f32 %v1682_v51, 0.0  ;;  %v1789_v38 = vrot.slane %v3810_v49, 1  ;;  %v1803_v43 = vrot.slane %v3810_v49, 2 }
 0x349   :  { %v1702_v55 = vrot.slane %v3817_v7, 1  ;;  %v1718_v60 = vrot.slane %v3817_v7, 2 }
 0x34b   :  { %1805 = vrot.lane.b32.xlu0 %v1761_v9, %s2835_s20  ;;  %1765 = vrot.lane.b32.xlu1 %v1761_v9, %s2831_s30 }
 0x34f   :  { %1705 = vrot.lane.b32.xlu0 %v1701_v46, %s2833_s18  ;;  %1779 = vrot.lane.b32.xlu1 %v3810_v49, %s2832_s19 }
 0x353   :  { %1721 = vrot.lane.b32.xlu0 %v1717_v14, %s2829_s5  ;;  %1793 = vrot.lane.b32.xlu1 %v1789_v38, %s2836_s26 }
 0x357   :  { %1735 = vrot.lane.b32.xlu0 %v3817_v7, %s2830_s6  ;;  %1707 = vrot.lane.b32.xlu1 %v1702_v55, %s2833_s18 }
 0x359   :  { %v2578_v18 = vpop.f32.mrf.mxu1 }
 0x35a   :  { %v1672_v45 = vmul.f32 %v2578_v18, %v2447_v44 }
 0x35b   :  { %1749 = vrot.lane.b32.xlu0 %v1702_v55, %s2834_s1  ;;  %1723 = vrot.lane.b32.xlu1 %v1718_v60, %s2829_s5  ;;  %v1644_v50 = vpop.f32.mrf.mxu1 }
 0x35c   :  { %v1687_v30 = vadd.f32 %v3797_v11, %v1672_v45  ;;  %v1670_v3 = vmul.f32 %v2447_v44, %v1644_v50 }
 0x35d   :  { %v2579_v4 = vpop.f32.mrf.mxu1 }
 0x35e   :  { %v1695_v8 = vmax.f32 %v1687_v30, 0.0  ;;  %v1685_v52 = vadd.f32 %v3797_v11, %v1670_v3  ;;  %v1673_v26 = vmul.f32 %v2579_v4, %v2447_v44 }
 0x35f   :  { %1763 = vrot.lane.b32.xlu0 %v1718_v60, %s2831_s30  ;;  %v1647_v33 = vpop.f32.mrf.mxu1 }
 0x360   :  { %1741 = vrot.lane.b32.xlu1 %v1695_v8, %s2830_s6  ;;  %v1748_v57 = vrot.slane %v1695_v8, 1  ;;  %v3841_v16 = vmax.f32 %v1685_v52, 0.0  ;;  %v1688_v31 = vadd.f32 %v3797_v11, %v1673_v26  ;;  %v1671_v12 = vmul.f32 %v2447_v44, %v1647_v33  ;;  %v1917_v44 = vld [vmem:[%s4184_s10] sm:$0xff] }
 0x361   :  { %v1762_v40 = vrot.slane %v1695_v8, 2 }
 0x362   :  { %v1703_v58 = vrot.slane %v3841_v16, 1  ;;  %v1696_v28 = vmax.f32 %v1688_v31, 0.0  ;;  %v1686_v0 = vadd.f32 %v3797_v11, %v1671_v12  ;;  %v1719_v56 = vrot.slane %v3841_v16, 2  ;;  %v1918_v11 = vld [vmem:[%s4184_s10 + $0x8] sm:$0xff] }
 0x363   :  { %1781 = vrot.lane.b32.xlu0 %v1695_v8, %s2832_s19  ;;  %v1982_v1 = vpack.c.bf16 %v1918_v11, %v1917_v44 }
 0x364   :  { %1755 = vrot.lane.b32.xlu1 %v1748_v57, %s2834_s1  ;;  %v3863_v24 = vmax.f32 %v1686_v0, 0.0  ;;  %v1790_v6 = vrot.slane %v1696_v28, 1  ;;  %v1804_v41 = vrot.slane %v1696_v28, 2 }
 0x365   :  { %2588 = vmatprep.subr.bf16.mxu0 %v1982_v1 }
 0x366   :  { %v1704_v48 = vrot.slane %v3863_v24, 1  ;;  %v1720_v36 = vrot.slane %v3863_v24, 2  ;;  %2589 = vmatpush3.bf16.msra.mxu0 %v1982_v1 }
 0x367   :  { %1795 = vrot.lane.b32.xlu0 %v1748_v57, %s2836_s26 }
 0x368   :  { %1769 = vrot.lane.b32.xlu1 %v1762_v40, %s2831_s30 }
 0x36b   :  { %1709 = vrot.lane.b32.xlu0 %v1703_v58, %s2833_s18 }
 0x36c   :  { %1783 = vrot.lane.b32.xlu1 %v1696_v28, %s2832_s19 }
 0x36f   :  { %1725 = vrot.lane.b32.xlu0 %v1719_v56, %s2829_s5 }
 0x370   :  { %1797 = vrot.lane.b32.xlu1 %v1790_v6, %s2836_s26 }
 0x373   :  { %1739 = vrot.lane.b32.xlu0 %v3863_v24, %s2830_s6 }
 0x374   :  { %1711 = vrot.lane.b32.xlu1 %v1704_v48, %s2833_s18 }
 0x377   :  { %1753 = vrot.lane.b32.xlu0 %v1704_v48, %s2834_s1 }
 0x378   :  { %1727 = vrot.lane.b32.xlu1 %v1720_v36, %s2829_s5 }
 0x37b   :  { %1767 = vrot.lane.b32.xlu0 %v1720_v36, %s2831_s30  ;;  %s2839_s30 = smov 96  }
 0x37c   :  { %1807 = vrot.lane.b32.xlu1 %v1803_v43, %s2835_s20 }
 0x37f   :  { %1809 = vrot.lane.b32.xlu0 %v1762_v40, %s2835_s20 }
 0x380   :  { %1811 = vrot.lane.b32.xlu1 %v1804_v41, %s2835_s20 }
 0x3b5   :  { %v1778_v15 = vpop.permute.xlu0 %1777  ;;  %v1738_v19 = vpop.permute.xlu1 %1737 }
 0x3b9   :  { %v1792_v35 = vpop.permute.xlu0 %1791  ;;  %v1752_v17 = vpop.permute.xlu1 %1751 }
 0x3bd   :  { %v1806_v47 = vpop.permute.xlu0 %1805  ;;  %v1766_v10 = vpop.permute.xlu1 %1765 }
 0x3c1   :  { %v1706_v63 = vpop.permute.xlu0 %1705  ;;  %v1780_v27 = vpop.permute.xlu1 %1779 }
 0x3c2   :  { %v1817_v45 = vsel %vm1489_vm5, %v3805_v20, %v1706_v63 }
 0x3c5   :  { %v1722_v59 = vpop.permute.xlu0 %1721  ;;  %v1794_v61 = vpop.permute.xlu1 %1793 }
 0x3c6   :  { %v1821_v30 = vsel %vm1498_vm6, %v1817_v45, %v1722_v59 }
 0x3c9   :  { %v1736_v42 = vpop.permute.xlu0 %1735  ;;  %v1708_v9 = vpop.permute.xlu1 %1707 }
 0x3ca   :  { %v1818_v3 = vsel %vm1489_vm5, %v3817_v7, %v1708_v9  ;;  %v1825_v25 = vsel %vm1507_vm7, %v1821_v30, %v1736_v42 }
 0x3cd   :  { %v1750_v49 = vpop.permute.xlu0 %1749  ;;  %v1724_v51 = vpop.permute.xlu1 %1723 }
 0x3ce   :  { %v1822_v4 = vsel %vm1498_vm6, %v1818_v3, %v1724_v51  ;;  %v1829_v32 = vsel %vm1516_vm8, %v1825_v25, %v1750_v49 }
 0x3cf   :  { %v1826_v26 = vsel %vm1507_vm7, %v1822_v4, %v1738_v19 }
 0x3d0   :  { %v1830_v33 = vsel %vm1516_vm8, %v1826_v26, %v1752_v17 }
 0x3d1   :  { %v1764_v46 = vpop.permute.xlu0 %1763  ;;  %v1834_v40 = vsel %vm1525_vm9, %v1830_v33, %v1766_v10 }
 0x3d2   :  { %v1742_v14 = vpop.permute.xlu1 %1741  ;;  %v1833_v52 = vsel %vm1525_vm9, %v1829_v32, %v1764_v46  ;;  %v1838_v22 = vsel %vm1534_vm10, %v1834_v40, %v1780_v27  ;;  %v2242_v40 = vld [vmem:[%s4187_s13 + $0x78] sm:$0xff] }
 0x3d3   :  { %v1837_v20 = vsel %vm1534_vm10, %v1833_v52, %v1778_v15  ;;  %v1842_v41 = vsel %vm1543_vm11, %v1838_v22, %v1794_v61  ;;  %v2236_v22 = vld [vmem:[%s4187_s13 + $0x48] sm:$0xff] }
 0x3d4   :  { %v1841_v7 = vsel %vm1543_vm11, %v1837_v20, %v1792_v35 }
 0x3d5   :  { %v1782_v38 = vpop.permute.xlu0 %1781  ;;  %v1845_v23 = vsel %vm1552_vm12, %v1841_v7, %v1806_v47  ;;  %v2241_v7 = vld [vmem:[%s4187_s13 + $0x70] sm:$0xff] }
 0x3d6   :  { %v1756_v55 = vpop.permute.xlu1 %1755  ;;  %v1860_v13 = vrot.slane %v1845_v23, %v3120_v29  ;;  %v1853_v43 = vcombine.high %v1845_v23, %v1845_v23  ;;  %v2240_v23 = vld [vmem:[%s4187_s13 + $0x68] sm:$0xff] }
 0x3d8   :  { %v1868_v35 = vcombine.high %v1860_v13, %v1860_v13  ;;  %v1867_v17 = vrot.slane %v1853_v43, %v3120_v29 }
 0x3d9   :  { %v1796_v18 = vpop.permute.xlu0 %1795 }
 0x3da   :  { %v1770_v60 = vpop.permute.xlu1 %1769 }
 0x3dd   :  { %v1710_v50 = vpop.permute.xlu0 %1709 }
 0x3de   :  { %v1784_v8 = vpop.permute.xlu1 %1783  ;;  %v1819_v37 = vsel %vm1489_vm5, %v3841_v16, %v1710_v50 }
 0x3e1   :  { %v1726_v53 = vpop.permute.xlu0 %1725 }
 0x3e2   :  { %v1798_v57 = vpop.permute.xlu1 %1797  ;;  %v1823_v0 = vsel %vm1498_vm6, %v1819_v37, %v1726_v53 }
 0x3e5   :  { %v1740_v31 = vpop.permute.xlu0 %1739 }
 0x3e6   :  { %v1712_v12 = vpop.permute.xlu1 %1711  ;;  %v1827_v34 = vsel %vm1507_vm7, %v1823_v0, %v1740_v31 }
 0x3e7   :  { %v1820_v58 = vsel %vm1489_vm5, %v3863_v24, %v1712_v12 }
 0x3e9   :  { %v1754_v54 = vpop.permute.xlu0 %1753 }
 0x3ea   :  { %v1728_v28 = vpop.permute.xlu1 %1727  ;;  %v1831_v48 = vsel %vm1516_vm8, %v1827_v34, %v1754_v54  ;;  %v2260_v54 = vpack.c.bf16 %v2242_v40, %v2241_v7 }
 0x3eb   :  { %v1824_v56 = vsel %vm1498_vm6, %v1820_v58, %v1728_v28  ;;  %v2237_v58 = vld [vmem:[%s4187_s13 + $0x50] sm:$0xff]  ;;  %v2238_v28 = vld [vmem:[%s4187_s13 + $0x58] sm:$0xff] }
 0x3ec   :  { %v1828_v6 = vsel %vm1507_vm7, %v1824_v56, %v1742_v14  ;;  %2276 = vmatpush1.bf16.msra.mxu1 %v2260_v54  ;;  %v2258_v0 = vpack.c.bf16 %v2238_v28, %v2237_v58  ;;  %v2235_v56 = vld [vmem:[%s4187_s13 + $0x40] sm:$0xff]  ;;  %v2110_v28 = vsub.s32 3, %v3114_v21 }
 0x3ed   :  { %v1832_v16 = vsel %vm1516_vm8, %v1828_v6, %v1756_v55  ;;  %v1768_v36 = vpop.permute.xlu0 %1767  ;;  %2277 = vmatprep.subr.bf16.mxu1 %v4212_v2  ;;  %v2257_v34 = vpack.c.bf16 %v2236_v22, %v2235_v56  ;;  %v2233_v6 = vld [vmem:[%s4187_s13 + $0x30] sm:$0xff]  ;;  %v2243_v22 = vld [vmem:[%s4187_s13 + $0x80] sm:$0xff] }
 0x3ee   :  { %v1835_v24 = vsel %vm1525_vm9, %v1831_v48, %v1768_v36  ;;  %v1808_v62 = vpop.permute.xlu1 %1807  ;;  %v1836_v39 = vsel %vm1525_vm9, %v1832_v16, %v1770_v60  ;;  %v2231_v16 = vld [vmem:[%s4187_s13 + $0x20] sm:$0xff]  ;;  %v2232_v36 = vld [vmem:[%s4187_s13 + $0x28] sm:$0xff] }
 0x3ef   :  { %v1839_v44 = vsel %vm1534_vm10, %v1835_v24, %v1782_v38  ;;  %v1846_v5 = vsel %vm1552_vm12, %v1842_v41, %v1808_v62  ;;  %v1840_v11 = vsel %vm1534_vm10, %v1836_v39, %v1784_v8  ;;  %v1926_v38 = vcombine.low %v1860_v13, %v1868_v35  ;;  %v2234_v13 = vld [vmem:[%s4187_s13 + $0x38] sm:$0xff]  ;;  %v2229_v24 = vld [vmem:[%s4187_s13 + $0x10] sm:$0xff]  ;;  %v2227_v39 = vld [vmem:[%s4187_s13] sm:$0xff] }
 0x3f0   :  { %v1869_v1 = vcombine.high %v1846_v5, %v1846_v5  ;;  %v1876_v15 = vrot.slane %v1846_v5, %v3120_v29  ;;  %v1843_v19 = vsel %vm1543_vm11, %v1839_v44, %v1796_v18  ;;  %v1844_v59 = vsel %vm1543_vm11, %v1840_v11, %v1798_v57  ;;  %v2230_v41 = vld [vmem:[%s4187_s13 + $0x18] sm:$0xff]  ;;  %v2228_v44 = vld [vmem:[%s4187_s13 + $0x8] sm:$0xff]  ;;  %v2451_v11 = vld [vmem:[%s4185_s11] ss:$0 sm:$0xff] }
 0x3f1   :  { %v1810_v47 = vpop.permute.xlu0 %1809  ;;  %v1934_v4 = vrot.slane %v1926_v38, %v3120_v29  ;;  %v2256_v48 = vpack.c.bf16 %v2234_v13, %v2233_v6  ;;  %v2255_v43 = vpack.c.bf16 %v2232_v36, %v2231_v16  ;;  %v2254_v62 = vpack.c.bf16 %v2230_v41, %v2229_v24  ;;  %v2250_v35 = vld [vmem:[%s4187_s13 + $0xb8] sm:$0xff]  ;;  %v2247_v38 = vld [vmem:[%s4187_s13 + $0xa0] sm:$0xff] }
 0x3f2   :  { %v1883_v10 = vrot.slane %v1869_v1, %v3120_v29  ;;  %v1884_v63 = vcombine.high %v1876_v15, %v1876_v15  ;;  %v1847_v27 = vsel %vm1552_vm12, %v1843_v19, %v1810_v47  ;;  %v1812_v61 = vpop.permute.xlu1 %1811  ;;  %v1927_v42 = vcombine.low %v1867_v17, %v1876_v15  ;;  %v2452_v15 = vld [vmem:[%s4186_s12] ss:$0 sm:$0xff]  ;;  %v2249_v19 = vld [vmem:[%s4187_s13 + $0xb0] sm:$0xff] }
 0x3f3   :  { %v1885_v9 = vcombine.high %v1847_v27, %v1847_v27  ;;  %v1892_v49 = vrot.slane %v1847_v27, %v3120_v29  ;;  %v1848_v51 = vsel %vm1552_vm12, %v1844_v59, %v1812_v61  ;;  %v2253_v5 = vpack.c.bf16 %v2228_v44, %v2227_v39  ;;  %v2330_v44 = vld [vmem:[%s4189_s15 + $0x70] sm:$0xff] }
 0x3f4   :  { %v1901_v46 = vcombine.high %v1848_v51, %v1848_v51  ;;  %v1908_v14 = vrot.slane %v1848_v51, %v3120_v29  ;;  %v1943_v55 = vcombine.low %v1884_v63, %v1883_v10  ;;  %v1941_v30 = vrot.slane %v1927_v42, %v3120_v29 }
 0x3f5   :  { %v1899_v18 = vrot.slane %v1885_v9, %v3120_v29  ;;  %v1900_v60 = vcombine.high %v1892_v49, %v1892_v49  ;;  %v2264_v47 = vpack.c.bf16 %v2250_v35, %v2249_v19 }
 0x3f6   :  { %v1915_v45 = vrot.slane %v1901_v46, %v3120_v29  ;;  %v1916_v50 = vcombine.high %v1908_v14, %v1908_v14  ;;  %v1951_v32 = vrot.slane %v1943_v55, %v3120_v29  ;;  %v1942_v57 = vcombine.low %v1934_v4, %v1941_v30  ;;  %v2248_v55 = vld [vmem:[%s4187_s13 + $0xa8] sm:$0xff] }
 0x3f7   :  { %v1944_v3 = vcombine.low %v1892_v49, %v1900_v60  ;;  %v1960_v8 = vcombine.low %v1899_v18, %v1908_v14  ;;  %v2086_v49 = vsub.s32 1, %v3114_v21  ;;  %v4018_v14 = vsub.s32 0, %v3114_v21 }
 0x3f8   :  { %v1961_v25 = vcombine.low %v1916_v50, %v1915_v45  ;;  %v2263_v18 = vpack.c.bf16 %v2248_v55, %v2247_v38  ;;  %v2324_v55 = vld [vmem:[%s4189_s15 + $0x40] sm:$0xff] }
 0x3f9   :  { %v1958_v52 = vrot.slane %v1944_v3, %v3120_v29  ;;  %v1968_v53 = vrot.slane %v1960_v8, %v3120_v29  ;;  %v2098_v3 = vsub.s32 2, %v3114_v21 }
 0x3fa   :  { %v1975_v26 = vrot.slane %v1961_v25, %v3120_v29  ;;  %v2239_v29 = vld [vmem:[%s4187_s13 + $0x60] sm:$0xff] }
 0x3fb   :  { %v1959_v20 = vcombine.low %v1951_v32, %v1958_v52  ;;  %v2259_v37 = vpack.c.bf16 %v2240_v23, %v2239_v29 }
 0x3fc   :  { %v1976_v33 = vcombine.low %v1968_v53, %v1975_v26 }
 0x3fd   :  { %v1980_v31 = vpack.c.bf16 %v1959_v20, %v1942_v57  ;;  %2278 = vmatpush1.bf16.msra.mxu1 %v2259_v37 }
 0x3fe   :  { %v1981_v12 = vpack.c.bf16 %v1976_v33, %v1976_v33  ;;  %2279 = vmatprep.subr.bf16.mxu1 %v4212_v2  ;;  %v2245_v33 = vld [vmem:[%s4187_s13 + $0x90] sm:$0xff] }
 0x3ff   :  { %2590 = vmatprep.mubr.msk.bf16.mxu0 %vm306_vm3, %v1980_v31  ;;  %v2246_v31 = vld [vmem:[%s4187_s13 + $0x98] sm:$0xff] }
 0x400   :  { %2591 = vmatmul.mubr.msk.bf16.vlgmr.msra.gmra.mxu0 %vm306_vm3, %v1981_v12  ;;  %v2262_v56 = vpack.c.bf16 %v2246_v31, %v2245_v33 }
 0x401   :  { %2280 = vmatpush1.bf16.msra.mxu1 %v2258_v0 }
 0x402   :  { %2281 = vmatprep.subr.bf16.mxu1 %v4212_v2 }
 0x405   :  { %2282 = vmatpush1.bf16.msra.mxu1 %v2257_v34  ;;  %v2244_v34 = vld [vmem:[%s4187_s13 + $0x88] sm:$0xff] }
 0x406   :  { %2283 = vmatprep.subr.bf16.mxu1 %v4212_v2  ;;  %v2261_v39 = vpack.c.bf16 %v2244_v34, %v2243_v22 }
 0x409   :  { %2284 = vmatpush1.bf16.msra.mxu1 %v2256_v48 }
 0x40a   :  { %2285 = vmatprep.subr.bf16.mxu1 %v4212_v2 }
 0x40d   :  { %2286 = vmatpush1.bf16.msra.mxu1 %v2255_v43 }
 0x40e   :  { %2287 = vmatprep.subr.bf16.mxu1 %v4212_v2 }
 0x411   :  { %2288 = vmatpush1.bf16.msra.mxu1 %v2254_v62 }
 0x412   :  { %2289 = vmatprep.subr.bf16.mxu1 %v4212_v2 }
 0x415   :  { %2290 = vmatpush1.bf16.msra.mxu1 %v2253_v5  ;;  %v2331_v5 = vld [vmem:[%s4189_s15 + $0x78] sm:$0xff] }
 0x416   :  { %2299 = vmatprep.subr.bf16.mxu1 %v4212_v2 }
 0x419   :  { %2300 = vmatpush2.bf16.msra.mxu1 %v2264_v47 }
 0x41a   :  { %2301 = vmatprep.subr.bf16.mxu1 %v4212_v2 }
 0x41d   :  { %2302 = vmatpush2.bf16.msra.mxu1 %v2263_v18  ;;  %v2325_v18 = vld [vmem:[%s4189_s15 + $0x48] sm:$0xff] }
 0x41e   :  { %2303 = vmatprep.subr.bf16.mxu1 %v4212_v2 }
 0x421   :  { %2304 = vmatpush2.bf16.msra.mxu1 %v2262_v56 }
 0x422   :  { %2305 = vmatprep.subr.bf16.mxu1 %v4212_v2  ;;  %v2329_v2 = vld [vmem:[%s4189_s15 + $0x68] sm:$0xff] }
 0x425   :  { %2306 = vmatpush2.bf16.msra.mxu1 %v2261_v39 }
 0x4c0   :  { %v2592_v1 = vpop.f32.mrf.mxu0 }
 0x4c1   :  { %v2053_v17 = vmul.f32 %v2592_v1, %v2451_v11  ;;  %v2340_v1 = vpack.c.bf16 %v2331_v5, %v2330_v44 }
 0x4c2   :  { %v2030_v10 = vpop.f32.mrf.mxu0 }
 0x4c3   :  { %v2063_v63 = vadd.f32 %v2452_v15, %v2053_v17  ;;  %v2051_v27 = vmul.f32 %v2451_v11, %v2030_v10  ;;  %v2838_v17 = vmov 0.0  }
 0x4c4   :  { %v2593_v59 = vpop.f32.mrf.mxu0  ;;  %2594 = vmatprep.subr.bf16.mxu0 %v2838_v17  ;;  %2610 = vmatprep.mubr.msk.bf16.mxu0 %vm2841_vm1, %v2838_v17 }
 0x4c5   :  { %v2061_v61 = vadd.f32 %v2452_v15, %v2051_v27  ;;  %v4012_v42 = vmax.f32 %v2063_v63, 0.0  ;;  %2595 = vmatpush3.bf16.msra.mxu0 %v2340_v1 }
 0x4c6   :  { %v2033_v9 = vpop.f32.mrf.mxu0  ;;  %2596 = vmatprep.subr.bf16.mxu0 %v2838_v17 }
 0x4c7   :  { %v4015_v51 = vmax.f32 %v2061_v61, 0.0  ;;  %v2052_v46 = vmul.f32 %v2451_v11, %v2033_v9  ;;  %v4032_v50 = vcombine.high %v4012_v42, %v4012_v42  ;;  %v2139_v30 = vrot.slane %v4012_v42, %v2086_v49  ;;  %v2328_v11 = vld [vmem:[%s4189_s15 + $0x60] sm:$0xff]  ;;  %v2326_v61 = vld [vmem:[%s4189_s15 + $0x50] sm:$0xff]  ;;  %v2327_v9 = vld [vmem:[%s4189_s15 + $0x58] sm:$0xff] }
 0x4c8   :  { %v2127_v32 = vrot.slane %v4012_v42, %v4018_v14  ;;  %v2339_v47 = vpack.c.bf16 %v2329_v2, %v2328_v11  ;;  %v2455_v2 = vld [vmem:[%s4190_s16] ss:$0 sm:$0xff] }
 0x4c9   :  { %v2062_v60 = vadd.f32 %v2452_v15, %v2052_v46  ;;  %v4028_v45 = vcombine.high %v4015_v51, %v4015_v51  ;;  %v2076_v52 = vrot.slane %v4015_v51, %v4018_v14  ;;  %v2099_v12 = vrot.slane %v4015_v51, %v2098_v3 }
 0x4ca   :  { %v2197_v7 = vrot.slane %v4032_v50, %v2098_v3  ;;  %v2087_v54 = vrot.slane %v4015_v51, %v2086_v49  ;;  %v2185_v37 = vrot.slane %v4032_v50, %v2086_v49  ;;  %v2175_v62 = vrot.slane %v4032_v50, %v4018_v14  ;;  %2597 = vmatpush3.bf16.msra.mxu0 %v2339_v47 }
 0x4cb   :  { %v4036_v8 = vmax.f32 %v2062_v60, 0.0  ;;  %v2135_v25 = vrot.slane %v4028_v45, %v2086_v49  ;;  %v2123_v4 = vrot.slane %v4028_v45, %v4018_v14  ;;  %v2147_v43 = vrot.slane %v4028_v45, %v2098_v3  ;;  %2598 = vmatprep.subr.bf16.mxu0 %v2838_v17  ;;  %v2322_v60 = vld [vmem:[%s4189_s15 + $0x30] sm:$0xff] }
 0x4cc   :  { %v2151_v15 = vrot.slane %v4012_v42, %v2098_v3  ;;  %v2111_v19 = vrot.slane %v4015_v51, %v2110_v28  ;;  %v2159_v27 = vrot.slane %v4028_v45, %v2110_v28  ;;  %v2209_v51 = vrot.slane %v4032_v50, %v2110_v28  ;;  %v2323_v45 = vld [vmem:[%s4189_s15 + $0x38] sm:$0xff] }
 0x4cd   :  { %v2071_v53 = vcombine.high %v4036_v8, %v4036_v8  ;;  %v2140_v26 = vsel %vm2081_vm13, %v2139_v30, %v2135_v25  ;;  %v2128_v57 = vsel %vm2081_vm13, %v2127_v32, %v2123_v4  ;;  %v2193_v20 = vrot.slane %v4036_v8, %v2098_v3  ;;  %v2320_v30 = vld [vmem:[%s4189_s15 + $0x20] sm:$0xff] }
 0x4ce   :  { %2141 = vrot.lane.b32.xlu0 %v2140_v26, %s2837_s0  ;;  %2129 = vrot.lane.b32.xlu1 %v2128_v57, %s2835_s20  ;;  %v2181_v40 = vrot.slane %v4036_v8, %v2086_v49  ;;  %v2171_v21 = vrot.slane %v4036_v8, %v4018_v14  ;;  %v2152_v10 = vsel %vm2081_vm13, %v2151_v15, %v2147_v43 }
 0x4cf   :  { %v2103_v29 = vrot.slane %v2071_v53, %v2098_v3  ;;  %v2091_v23 = vrot.slane %v2071_v53, %v2086_v49  ;;  %v2198_v58 = vsel %vm2081_vm13, %v2197_v7, %v2193_v20  ;;  %v2080_v0 = vrot.slane %v2071_v53, %v4018_v14  ;;  %v2321_v3 = vld [vmem:[%s4189_s15 + $0x28] sm:$0xff] }
 0x4d0   :  { %v2186_v48 = vsel %vm2081_vm13, %v2185_v37, %v2181_v40  ;;  %v2115_v41 = vrot.slane %v2071_v53, %v2110_v28  ;;  %v2176_v35 = vsel %vm2081_vm13, %v2175_v62, %v2171_v21  ;;  %v2205_v59 = vrot.slane %v4036_v8, %v2110_v28  ;;  %v2316_v21 = vld [vmem:[%s4189_s15] sm:$0xff] }
 0x4d1   :  { %v2104_v6 = vsel %vm2081_vm13, %v2103_v29, %v2099_v12  ;;  %v2092_v13 = vsel %vm2081_vm13, %v2091_v23, %v2087_v54  ;;  %v4079_v24 = vsel %vm2081_vm13, %v2080_v0, %v2076_v52  ;;  %v2163_v49 = vrot.slane %v4012_v42, %v2110_v28 }
 0x4d2   :  { %v2799_v16 = vpack.i.bf16 %v2198_v58, %v2104_v6  ;;  %v2794_v36 = vpack.i.bf16 %v2186_v48, %v2092_v13  ;;  %v2116_v63 = vsel %vm2081_vm13, %v2115_v41, %v2111_v19  ;;  %v2338_v46 = vpack.c.bf16 %v2327_v9, %v2326_v61  ;;  %v2318_v13 = vld [vmem:[%s4189_s15 + $0x10] sm:$0xff]  ;;  %v2319_v48 = vld [vmem:[%s4189_s15 + $0x18] sm:$0xff] }
 0x4d3   :  { %v2164_v14 = vsel %vm2081_vm13, %v2163_v49, %v2159_v27  ;;  %v2210_v38 = vsel %vm2081_vm13, %v2209_v51, %v2205_v59  ;;  %v2337_v42 = vpack.c.bf16 %v2325_v18, %v2324_v55  ;;  %v2336_v50 = vpack.c.bf16 %v2323_v45, %v2322_v60 }
 0x4d4   :  { %2800 = vrot.lane.b32.xlu1 %v2799_v16, %s2834_s1  ;;  %2795 = vrot.lane.b32.xlu0 %v2794_v36, %s2829_s5  ;;  %v2335_v8 = vpack.c.bf16 %v2321_v3, %v2320_v30  ;;  %v2334_v16 = vpack.c.bf16 %v2319_v48, %v2318_v13  ;;  %v2317_v36 = vld [vmem:[%s4189_s15 + $0x8] sm:$0xff] }
 0x4d5   :  { %2599 = vmatpush3.bf16.msra.mxu0 %v2338_v46  ;;  %v2333_v43 = vpack.c.bf16 %v2317_v36, %v2316_v21 }
 0x4d6   :  { %2600 = vmatprep.subr.bf16.mxu0 %v2838_v17 }
 0x4d8   :  { %2153 = vrot.lane.b32.xlu1 %v2152_v10, %s2839_s30  ;;  %2117 = vrot.lane.b32.xlu0 %v2116_v63, %s2832_s19 }
 0x4d9   :  { %2601 = vmatpush3.bf16.msra.mxu0 %v2337_v42 }
 0x4da   :  { %2602 = vmatprep.subr.bf16.mxu0 %v2838_v17 }
 0x4dc   :  { %2165 = vrot.lane.b32.xlu1 %v2164_v14, %s2840_s8  ;;  %2211 = vrot.lane.b32.xlu0 %v2210_v38, %s2832_s19 }
 0x4dd   :  { %2603 = vmatpush3.bf16.msra.mxu0 %v2336_v50 }
 0x4de   :  { %2604 = vmatprep.subr.bf16.mxu0 %v2838_v17 }
 0x4e1   :  { %2605 = vmatpush3.bf16.msra.mxu0 %v2335_v8 }
 0x4e2   :  { %2606 = vmatprep.subr.bf16.mxu0 %v2838_v17 }
 0x4e5   :  { %2607 = vmatpush3.bf16.msra.mxu0 %v2334_v16 }
 0x4e6   :  { %2608 = vmatprep.subr.bf16.mxu0 %v2838_v17 }
 0x4e9   :  { %2609 = vmatpush3.bf16.msra.mxu0 %v2333_v43 }
 0x540   :  { %v2142_v25 = vpop.permute.xlu0 %2141  ;;  %v2130_v4 = vpop.permute.xlu1 %2129 }
 0x546   :  { %v2801_v32 = vpop.permute.xlu1 %2800  ;;  %v2796_v52 = vpop.permute.xlu0 %2795 }
 0x547   :  { %v2802_v53 = vunpack.i.l.bf16 %v2801_v32  ;;  %v2798_v26 = vunpack.i.h.bf16 %v2796_v52  ;;  %v2797_v57 = vunpack.i.l.bf16 %v2796_v52  ;;  %v2803_v33 = vunpack.i.h.bf16 %v2801_v32 }
 0x549   :  { %v2214_v20 = vsel %vm1498_vm6, %v4079_v24, %v2797_v57  ;;  %v2224_v29 = vsel %vm1498_vm6, %v2176_v35, %v2798_v26  ;;  %v2453_v24 = vld [vmem:[%s4188_s14] ss:$0 sm:$0xff]  ;;  %s2843_s14 = smov [#allocation2]  }
 0x54a   :  { %v2154_v31 = vpop.permute.xlu1 %2153  ;;  %v2118_v12 = vpop.permute.xlu0 %2117  ;;  %v2215_v7 = vsel %vm1516_vm8, %v2214_v20, %v2802_v53  ;;  %v2225_v0 = vsel %vm1516_vm8, %v2224_v29, %v2803_v33  ;;  %s2415_s16 = sshll.u32 %s2843_s14, 4  ;;  %s2416_s16 = int_to_ptr.vmem [resolvable:$true] %s2415_s16 }
 0x54b   :  { %v2216_v40 = vsel %vm1534_vm10, %v2215_v7, %v2118_v12  ;;  %s2805_s29 = scalar_lea.vmem %s2416_s16, 32  ;;  %p2810_p1 = scmp.lt.s32.totalorder %s2416_s16, %s2416_s16 }
 0x54c   :  { %v2217_v54 = vsel %vm1552_vm12, %v2216_v40, %v2130_v4  ;;  %p2806_p0 = scmp.ne.s32.totalorder %s2416_s16, %s2805_s29  ;;  %p2811_p2 = scmp.lt.s32.totalorder %s2805_s29, %s2805_s29 }
 0x54d   :  { %v2219_v23 = vsel %vm2218_vm14, %v2217_v54, %v2142_v25 }
 0x54e   :  { %v2166_v37 = vpop.permute.xlu1 %2165  ;;  %v2221_v58 = vsel %vm2220_vm15, %v2219_v23, %v2154_v31  ;;  %v2212_v28 = vpop.permute.xlu0 %2211  ;;  %p2812_p3 = por %p2811_p2, %p2810_p1 }
 0x54f   :  { %v2223_v56 = vsel %vm2222_vm0, %v2221_v58, %v2166_v37  ;;  %v2226_v22 = vsel %vm1534_vm10, %v2225_v0, %v2212_v28 }
 0x550   :  { %v2251_v34 = vpack.c.bf16 %v2223_v56, %v2223_v56  ;;  %v2252_v6 = vpack.c.bf16 %v2226_v22, %v2226_v22  ;;  %p2813_p4 = pnand %p2812_p3, %p2806_p0 }
 0x552   :  { %2454 = vmatprep.mubr.msk.bf16.mxu1 %vm1552_vm12, %v2252_v6 }
 0x553   :  { %2308 = vmatmul.mubr.bf16.vlgmr.msra.gmra.mxu1 %v2251_v34 }
 0x613   :  { %v2309_v41 = vpop.f32.mrf.mxu1 }
 0x614   :  { %v2310_v62 = vadd.f32 %v2453_v24, %v2309_v41 }
 0x615   :  { %v2311_v39 = vpop.f32.mrf.mxu1 }
 0x616   :  { %v2315_v44 = vmax.f32 %v2310_v62, 0.0 }
 0x617   :  { %v2312_v5 = vpop.f32.mrf.mxu1 }
 0x618   :  { %v2332_v11 = vpack.c.bf16 %v2315_v44, %v2315_v44 }
 0x619   :  { %v2313_v1 = vpop.f32.mrf.mxu1 }
 0x61a   :  { %2611 = vmatmul.mubr.bf16.vlgmr.msra.gmra.mxu0 %v2332_v11 }
 0x6da   :  { %v2382_v15 = vpop.f32.mrf.mxu0 }
 0x6db   :  { %v2383_v19 = vadd.f32 %v2455_v2, %v2382_v15 }
 0x6dc   :  { %v2612_v35 = vpop.f32.mrf.mxu0 }
 0x6dd   :  { %2389 = vrot.lane.b32.xlu0 %v2383_v19, %s2842_s28 }
 0x6de   :  { %v2385_v17 = vpop.f32.mrf.mxu0 }
 0x6e0   :  { %v2613_v47 = vpop.f32.mrf.mxu0 }
 0x6e1   :  { %2400 = vperm.xlu0 %2804, %v2383_v19  }
 0x74f   :  { %v2390_v10 = vpop.permute.xlu0 %2389 }
 0x750   :  { %v2393_v63 = vsel %vm2392_vm2, %v2390_v10, 0.0 }
 0x751   :  { %2394 = vadd.xlane.f32.xlu1 %v2393_v63 }
 0x75c   :  { %v2401_v9 = vpop.permute.xlu0 %2400 }
 0x7da   :  { %v2395_v27 = vpop.xlane.xlu1 %2394 }
 0x7db   :  { %v2397_v59 = vmul.f32 0.25, %v2395_v27 }
 0x7dd   :  { %v2398_v61 = vsub.f32 %v2383_v19, %v2397_v59 }
 0x7df   :  { %v2403_v49 = vadd.f32 %v2401_v9, %v2398_v61 }
 0x7e1   :  { %2405 = vrot.lane.b32.xlu0 %v2403_v49, %s2842_s28 }
 0x853   :  { %v2406_v51 = vpop.permute.xlu0 %2405 }
 0x854   :  { %2408 = vst.msk [vmem:[#allocation2] sm:$0x3] %vm2392_vm2, %v2406_v51 }
 0x855   :  { %2816 = shalt.err (!%p2813_p4)
}
 0x856   :  { %2418 = dma.vmem_to_hbm [thread:$0]  %s2416_s16, 32, %s4191_s17, [#allocation3]  }
 0x857   :  { %2825 = dma.done.wait [#allocation3], 32  }
 0x858   :  { %2826 = vsyncadd [#allocation3], 4294967264 }
 0x859   :  { %2422 = vsyncpa [#allocation3], 1 }

</bundles_post_ra>
